<compile_context>
chip_gen: v6e
topology: v6e:2x2x1
jax: 0.10.0
libtpu: 0.0.40
codegen_flags: <defaults>
</compile_context>

<pallas_src>
import functools
import math

import jax
import jax.numpy as jnp
from jax.experimental import pallas as pl
from jax.experimental.pallas import tpu as pltpu


# ----------------------------- configuration ------------------------------- #

class Config:
    # mirrors the ConfigDict fields the PyTorch __init__ reads (small sizes)
    num_query = 8
    num_layers = 2
    num_attn_heads = 4
    vision_embedding_dim = 32     # encoder_hidden_size == hidden_size
    text_hidden_size = 48         # output_size
    mlp_ratio = 4


# Order in which parameters are passed to the fused kernel (after the image).
PARAM_ORDER = (
    "query", "ln_kv_g", "ln_kv_b",
    "ln1_g", "ln1_b", "wq", "bq", "wk", "bk", "wv", "bv", "wo", "bo",
    "ln2_g", "ln2_b", "w1", "b1", "w2", "b2",
    "lnf_g", "lnf_b", "w_out", "b_out",
)

# Weights that feed the MXU: cast to bf16 (f32 accumulation in-kernel).
MATMUL_WEIGHTS = frozenset({"wq", "wk", "wv", "wo", "w1", "w2", "w_out"})


# ------------------------------ fused kernel -------------------------------- #

def _attn_pooler_kernel(
    x_ref,                                   # (1, S, De) image features block
    query_ref, ln_kv_g_ref, ln_kv_b_ref,
    ln1_g_ref, ln1_b_ref, wq_ref, bq_ref, wk_ref, bk_ref,
    wv_ref, bv_ref, wo_ref, bo_ref,
    ln2_g_ref, ln2_b_ref, w1_ref, b1_ref, w2_ref, b2_ref,
    lnf_g_ref, lnf_b_ref, w_out_ref, b_out_ref,
    o_ref,                                   # (1, 1, O) output block
    *, num_layers, num_heads):
    f32 = jnp.float32

    def ln(x, g, b):
        x = x.astype(f32)
        mean = jnp.mean(x, axis=-1, keepdims=True)
        var = jnp.mean(jnp.square(x - mean), axis=-1, keepdims=True)
        y = (x - mean) * jax.lax.rsqrt(var + 1e-5)
        return y * g.astype(f32) + b.astype(f32)

    def dense(x, w, b):
        # bf16 MXU operands, f32 accumulate, f32 bias add.
        y = jnp.dot(x.astype(w.dtype), w, preferred_element_type=f32)
        return y + b.astype(f32)

    x = x_ref[0]                                            # (S, De) f32
    q = query_ref[...].astype(f32)                          # (NQ, D)
    x_kv = ln(x, ln_kv_g_ref[...], ln_kv_b_ref[...])        # (S, De) f32

    NQ, D = q.shape
    DH = D // num_heads
    scale = 1.0 / math.sqrt(DH)

    for l in range(num_layers):                             # static unroll
        # --- pre-norm cross-attention block ---
        qn = ln(q, ln1_g_ref[l], ln1_b_ref[l])
        Q = dense(qn, wq_ref[l], bq_ref[l])                 # (NQ, D) f32
        K = dense(x_kv, wk_ref[l], bk_ref[l])               # (S,  D) f32
        V = dense(x_kv, wv_ref[l], bv_ref[l])               # (S,  D) f32

        heads = []
        for h in range(num_heads):                          # static unroll
            sl = slice(h * DH, (h + 1) * DH)
            qh = Q[:, sl].astype(jnp.bfloat16)
            kh = K[:, sl].astype(jnp.bfloat16)
            vh = V[:, sl].astype(jnp.bfloat16)
            # scores = qh @ kh^T  (contract last dims, no explicit transpose)
            s = jax.lax.dot_general(qh, kh, (((1,), (1,)), ((), ())),
                                    preferred_element_type=f32) * scale
            m = jnp.max(s, axis=-1, keepdims=True)
            p = jnp.exp(s - m)
            denom = jnp.sum(p, axis=-1, keepdims=True)
            p = p * pl.reciprocal(denom, approx=True)       # EUP, ~free
            heads.append(jnp.dot(p.astype(jnp.bfloat16), vh,
                                 preferred_element_type=f32))
        attn = jnp.concatenate(heads, axis=-1)              # (NQ, D) f32
        attn = dense(attn, wo_ref[l], bo_ref[l])
        q = q + attn

        # --- pre-norm MLP block ---
        qn = ln(q, ln2_g_ref[l], ln2_b_ref[l])
        hden = dense(qn, w1_ref[l], b1_ref[l])
        # TODO(synk): GELU variant of the reference AttnPooler is unknown;
        #             tanh-approximate GELU is used (EUP-friendly on TPU).
        hden = jax.nn.gelu(hden, approximate=True)
        q = q + dense(hden, w2_ref[l], b2_ref[l])

    # final LayerNorm + output projection + mean-pool over the query tokens
    qn = ln(q, lnf_g_ref[...], lnf_b_ref[...])
    out = dense(qn, w_out_ref[...], b_out_ref[...])         # (NQ, O) f32
    o_ref[0] = jnp.mean(out, axis=0, keepdims=True).astype(o_ref.dtype)


# ------------------------------ params & wrapper ---------------------------- #

def init_params(cfg, key):
    D = cfg.vision_embedding_dim
    De = cfg.vision_embedding_dim
    O = cfg.text_hidden_size
    Hm = cfg.mlp_ratio * D
    L = cfg.num_layers

    def nrm(k, shape, scale=0.02):
        return (scale * jax.random.normal(k, shape)).astype(jnp.float32)

    keys = jax.random.split(key, 8)
    return {
        "query": nrm(keys[0], (cfg.num_query, D)),
        "ln_kv_g": jnp.ones((1, De), jnp.float32),
        "ln_kv_b": jnp.zeros((1, De), jnp.float32),
        "lnf_g": jnp.ones((1, D), jnp.float32),
        "lnf_b": jnp.zeros((1, D), jnp.float32),
        "w_out": nrm(keys[1], (D, O)),
        "b_out": jnp.zeros((1, O), jnp.float32),
        # per-layer params stacked on a leading layer axis (indexed statically
        # inside the fused kernel's unrolled layer loop)
        "ln1_g": jnp.ones((L, 1, D), jnp.float32),
        "ln1_b": jnp.zeros((L, 1, D), jnp.float32),
        "wq": nrm(keys[2], (L, D, D)),  "bq": jnp.zeros((L, 1, D), jnp.float32),
        "wk": nrm(keys[3], (L, De, D)), "bk": jnp.zeros((L, 1, D), jnp.float32),
        "wv": nrm(keys[4], (L, De, D)), "bv": jnp.zeros((L, 1, D), jnp.float32),
        "wo": nrm(keys[5], (L, D, D)),  "bo": jnp.zeros((L, 1, D), jnp.float32),
        "ln2_g": jnp.ones((L, 1, D), jnp.float32),
        "ln2_b": jnp.zeros((L, 1, D), jnp.float32),
        "w1": nrm(keys[6], (L, D, Hm)), "b1": jnp.zeros((L, 1, Hm), jnp.float32),
        "w2": nrm(keys[7], (L, Hm, D)), "b2": jnp.zeros((L, 1, D), jnp.float32),
    }


def embedding_model_forward(params, image_embedding, cfg):
    """image_embedding: (B, S, encoder_hidden) -> (B, text_hidden_size)."""
    B, S, De = image_embedding.shape
    O = cfg.text_hidden_size
    L = cfg.num_layers
    H = cfg.num_attn_heads

    def prep(name):
        a = params[name]
        return a.astype(jnp.bfloat16) if name in MATMUL_WEIGHTS else a

    args = [image_embedding] + [prep(n) for n in PARAM_ORDER]

    # Image features are blocked per batch element; every parameter is passed
    # as a whole-array VMEM block with a constant index map (stays resident).
    in_specs = [pl.BlockSpec((1, S, De), lambda b: (b, 0, 0))]
    for n in PARAM_ORDER:
        shp = params[n].shape
        in_specs.append(pl.BlockSpec(shp, lambda b, _nd=len(shp): (0,) * _nd))

    out = pl.pallas_call(
        functools.partial(_attn_pooler_kernel, num_layers=L, num_heads=H),
        out_shape=jax.ShapeDtypeStruct((B, 1, O), jnp.float32),
        grid=(B,),
        in_specs=in_specs,
        out_specs=pl.BlockSpec((1, 1, O), lambda b: (b, 0, 0)),
        compiler_params=pltpu.CompilerParams(
            dimension_semantics=("parallel",)),
    )(*args)
    return out.reshape(B, O)


# ----------------------------------- main ----------------------------------- #

if __name__ == "__main__":
    cfg = Config()
    key = jax.random.PRNGKey(0)
    pkey, xkey = jax.random.split(key)

    params = init_params(cfg, pkey)

    B, S = 2, 16
    image_embedding = jax.random.normal(
        xkey, (B, S, cfg.vision_embedding_dim), dtype=jnp.float32)

    # `data` dict from the PyTorch forward is unused by the reference forward,
    # so it is omitted here.
    out = embedding_model_forward(params, image_embedding, cfg)
    out = jax.block_until_ready(out)

    assert out.shape == (B, cfg.text_hidden_size), out.shape
    assert bool(jnp.all(jnp.isfinite(out)))
    print("KERNEL_OK")
</pallas_src>

<mosaic_0001>
module attributes {stable_mosaic.version = 11 : i64} {
  func.func @_attn_pooler_kernel(%arg0: i32, %arg1: memref<1x16x32xf32, #tpu.memory_space<vmem>>, %arg2: memref<8x32xf32, #tpu.memory_space<vmem>>, %arg3: memref<1x32xf32, #tpu.memory_space<vmem>>, %arg4: memref<1x32xf32, #tpu.memory_space<vmem>>, %arg5: memref<2x1x32xf32, #tpu.memory_space<vmem>>, %arg6: memref<2x1x32xf32, #tpu.memory_space<vmem>>, %arg7: memref<2x32x32xbf16, #tpu.memory_space<vmem>>, %arg8: memref<2x1x32xf32, #tpu.memory_space<vmem>>, %arg9: memref<2x32x32xbf16, #tpu.memory_space<vmem>>, %arg10: memref<2x1x32xf32, #tpu.memory_space<vmem>>, %arg11: memref<2x32x32xbf16, #tpu.memory_space<vmem>>, %arg12: memref<2x1x32xf32, #tpu.memory_space<vmem>>, %arg13: memref<2x32x32xbf16, #tpu.memory_space<vmem>>, %arg14: memref<2x1x32xf32, #tpu.memory_space<vmem>>, %arg15: memref<2x1x32xf32, #tpu.memory_space<vmem>>, %arg16: memref<2x1x32xf32, #tpu.memory_space<vmem>>, %arg17: memref<2x32x128xbf16, #tpu.memory_space<vmem>>, %arg18: memref<2x1x128xf32, #tpu.memory_space<vmem>>, %arg19: memref<2x128x32xbf16, #tpu.memory_space<vmem>>, %arg20: memref<2x1x32xf32, #tpu.memory_space<vmem>>, %arg21: memref<1x32xf32, #tpu.memory_space<vmem>>, %arg22: memref<1x32xf32, #tpu.memory_space<vmem>>, %arg23: memref<32x48xbf16, #tpu.memory_space<vmem>>, %arg24: memref<1x48xf32, #tpu.memory_space<vmem>>, %arg25: memref<1x1x48xf32, #tpu.memory_space<vmem>>) attributes {dimension_semantics = [#tpu.dimension_semantics<parallel>], iteration_bounds = array<i64: 2>, scalar_prefetch = 0 : i64, scratch_operands = 0 : i64, tpu.core_type = #tpu.core_type<tc>, window_params = [{transform_indices = @transform_0, window_bounds = array<i64: 1, 16, 32>}, {pipeline_mode = #tpu.pipeline_mode<synchronous>, transform_indices = @transform_1, window_bounds = array<i64: 8, 32>}, {pipeline_mode = #tpu.pipeline_mode<synchronous>, transform_indices = @transform_2, window_bounds = array<i64: 1, 32>}, {pipeline_mode = #tpu.pipeline_mode<synchronous>, transform_indices = @transform_3, window_bounds = array<i64: 1, 32>}, {pipeline_mode = #tpu.pipeline_mode<synchronous>, transform_indices = @transform_4, window_bounds = array<i64: 2, 1, 32>}, {pipeline_mode = #tpu.pipeline_mode<synchronous>, transform_indices = @transform_5, window_bounds = array<i64: 2, 1, 32>}, {pipeline_mode = #tpu.pipeline_mode<synchronous>, transform_indices = @transform_6, window_bounds = array<i64: 2, 32, 32>}, {pipeline_mode = #tpu.pipeline_mode<synchronous>, transform_indices = @transform_7, window_bounds = array<i64: 2, 1, 32>}, {pipeline_mode = #tpu.pipeline_mode<synchronous>, transform_indices = @transform_8, window_bounds = array<i64: 2, 32, 32>}, {pipeline_mode = #tpu.pipeline_mode<synchronous>, transform_indices = @transform_9, window_bounds = array<i64: 2, 1, 32>}, {pipeline_mode = #tpu.pipeline_mode<synchronous>, transform_indices = @transform_10, window_bounds = array<i64: 2, 32, 32>}, {pipeline_mode = #tpu.pipeline_mode<synchronous>, transform_indices = @transform_11, window_bounds = array<i64: 2, 1, 32>}, {pipeline_mode = #tpu.pipeline_mode<synchronous>, transform_indices = @transform_12, window_bounds = array<i64: 2, 32, 32>}, {pipeline_mode = #tpu.pipeline_mode<synchronous>, transform_indices = @transform_13, window_bounds = array<i64: 2, 1, 32>}, {pipeline_mode = #tpu.pipeline_mode<synchronous>, transform_indices = @transform_14, window_bounds = array<i64: 2, 1, 32>}, {pipeline_mode = #tpu.pipeline_mode<synchronous>, transform_indices = @transform_15, window_bounds = array<i64: 2, 1, 32>}, {pipeline_mode = #tpu.pipeline_mode<synchronous>, transform_indices = @transform_16, window_bounds = array<i64: 2, 32, 128>}, {pipeline_mode = #tpu.pipeline_mode<synchronous>, transform_indices = @transform_17, window_bounds = array<i64: 2, 1, 128>}, {pipeline_mode = #tpu.pipeline_mode<synchronous>, transform_indices = @transform_18, window_bounds = array<i64: 2, 128, 32>}, {pipeline_mode = #tpu.pipeline_mode<synchronous>, transform_indices = @transform_19, window_bounds = array<i64: 2, 1, 32>}, {pipeline_mode = #tpu.pipeline_mode<synchronous>, transform_indices = @transform_20, window_bounds = array<i64: 1, 32>}, {pipeline_mode = #tpu.pipeline_mode<synchronous>, transform_indices = @transform_21, window_bounds = array<i64: 1, 32>}, {pipeline_mode = #tpu.pipeline_mode<synchronous>, transform_indices = @transform_22, window_bounds = array<i64: 32, 48>}, {pipeline_mode = #tpu.pipeline_mode<synchronous>, transform_indices = @transform_23, window_bounds = array<i64: 1, 48>}, {transform_indices = @transform_24, window_bounds = array<i64: 1, 1, 48>}]} {
    %c0 = arith.constant 0 : index
    %c0_0 = arith.constant 0 : index
    %c0_1 = arith.constant 0 : index
    %0 = vector.load %arg1[%c0, %c0_0, %c0_1] : memref<1x16x32xf32, #tpu.memory_space<vmem>>, vector<1x16x32xf32>
    %1 = vector.shape_cast %0 : vector<1x16x32xf32> to vector<16x32xf32>
    %c0_2 = arith.constant 0 : index
    %c0_3 = arith.constant 0 : index
    %2 = vector.load %arg2[%c0_2, %c0_3] : memref<8x32xf32, #tpu.memory_space<vmem>>, vector<8x32xf32>
    %c0_4 = arith.constant 0 : index
    %c0_5 = arith.constant 0 : index
    %3 = vector.load %arg3[%c0_4, %c0_5] : memref<1x32xf32, #tpu.memory_space<vmem>>, vector<1x32xf32>
    %c0_6 = arith.constant 0 : index
    %c0_7 = arith.constant 0 : index
    %4 = vector.load %arg4[%c0_6, %c0_7] : memref<1x32xf32, #tpu.memory_space<vmem>>, vector<1x32xf32>
    %cst = arith.constant dense<0.000000e+00> : vector<16xf32>
    %5 = vector.multi_reduction <add>, %1, %cst [1] : vector<16x32xf32> to vector<16xf32>
    %6 = vector.shape_cast %5 : vector<16xf32> to vector<16x1xf32>
    %cst_8 = arith.constant 3.200000e+01 : f32
    %7 = vector.broadcast %cst_8 : f32 to vector<16x1xf32>
    %8 = arith.divf %6, %7 : vector<16x1xf32>
    %9 = vector.broadcast %8 : vector<16x1xf32> to vector<16x32xf32>
    %10 = arith.subf %1, %9 : vector<16x32xf32>
    %11 = arith.mulf %10, %10 : vector<16x32xf32>
    %cst_9 = arith.constant dense<0.000000e+00> : vector<16xf32>
    %12 = vector.multi_reduction <add>, %11, %cst_9 [1] : vector<16x32xf32> to vector<16xf32>
    %13 = vector.shape_cast %12 : vector<16xf32> to vector<16x1xf32>
    %cst_10 = arith.constant 3.200000e+01 : f32
    %14 = vector.broadcast %cst_10 : f32 to vector<16x1xf32>
    %15 = arith.divf %13, %14 : vector<16x1xf32>
    %16 = vector.broadcast %8 : vector<16x1xf32> to vector<16x32xf32>
    %17 = arith.subf %1, %16 : vector<16x32xf32>
    %cst_11 = arith.constant 9.99999974E-6 : f32
    %18 = vector.broadcast %cst_11 : f32 to vector<16x1xf32>
    %19 = arith.addf %15, %18 : vector<16x1xf32>
    %20 = math.rsqrt %19 : vector<16x1xf32>
    %21 = vector.broadcast %20 : vector<16x1xf32> to vector<16x32xf32>
    %22 = arith.mulf %17, %21 : vector<16x32xf32>
    %23 = vector.broadcast %3 : vector<1x32xf32> to vector<16x32xf32>
    %24 = arith.mulf %22, %23 : vector<16x32xf32>
    %25 = vector.broadcast %4 : vector<1x32xf32> to vector<16x32xf32>
    %26 = arith.addf %24, %25 : vector<16x32xf32>
    %c0_12 = arith.constant 0 : index
    %c0_13 = arith.constant 0 : index
    %c0_14 = arith.constant 0 : index
    %27 = vector.load %arg5[%c0_12, %c0_13, %c0_14] : memref<2x1x32xf32, #tpu.memory_space<vmem>>, vector<1x1x32xf32>
    %28 = vector.shape_cast %27 : vector<1x1x32xf32> to vector<1x32xf32>
    %c0_15 = arith.constant 0 : index
    %c0_16 = arith.constant 0 : index
    %c0_17 = arith.constant 0 : index
    %29 = vector.load %arg6[%c0_15, %c0_16, %c0_17] : memref<2x1x32xf32, #tpu.memory_space<vmem>>, vector<1x1x32xf32>
    %30 = vector.shape_cast %29 : vector<1x1x32xf32> to vector<1x32xf32>
    %cst_18 = arith.constant dense<0.000000e+00> : vector<8xf32>
    %31 = vector.multi_reduction <add>, %2, %cst_18 [1] : vector<8x32xf32> to vector<8xf32>
    %32 = vector.shape_cast %31 : vector<8xf32> to vector<8x1xf32>
    %cst_19 = arith.constant 3.200000e+01 : f32
    %33 = vector.broadcast %cst_19 : f32 to vector<8x1xf32>
    %34 = arith.divf %32, %33 : vector<8x1xf32>
    %35 = vector.broadcast %34 : vector<8x1xf32> to vector<8x32xf32>
    %36 = arith.subf %2, %35 : vector<8x32xf32>
    %37 = arith.mulf %36, %36 : vector<8x32xf32>
    %cst_20 = arith.constant dense<0.000000e+00> : vector<8xf32>
    %38 = vector.multi_reduction <add>, %37, %cst_20 [1] : vector<8x32xf32> to vector<8xf32>
    %39 = vector.shape_cast %38 : vector<8xf32> to vector<8x1xf32>
    %cst_21 = arith.constant 3.200000e+01 : f32
    %40 = vector.broadcast %cst_21 : f32 to vector<8x1xf32>
    %41 = arith.divf %39, %40 : vector<8x1xf32>
    %42 = vector.broadcast %34 : vector<8x1xf32> to vector<8x32xf32>
    %43 = arith.subf %2, %42 : vector<8x32xf32>
    %cst_22 = arith.constant 9.99999974E-6 : f32
    %44 = vector.broadcast %cst_22 : f32 to vector<8x1xf32>
    %45 = arith.addf %41, %44 : vector<8x1xf32>
    %46 = math.rsqrt %45 : vector<8x1xf32>
    %47 = vector.broadcast %46 : vector<8x1xf32> to vector<8x32xf32>
    %48 = arith.mulf %43, %47 : vector<8x32xf32>
    %49 = vector.broadcast %28 : vector<1x32xf32> to vector<8x32xf32>
    %50 = arith.mulf %48, %49 : vector<8x32xf32>
    %51 = vector.broadcast %30 : vector<1x32xf32> to vector<8x32xf32>
    %52 = arith.addf %50, %51 : vector<8x32xf32>
    %c0_23 = arith.constant 0 : index
    %c0_24 = arith.constant 0 : index
    %c0_25 = arith.constant 0 : index
    %53 = vector.load %arg7[%c0_23, %c0_24, %c0_25] : memref<2x32x32xbf16, #tpu.memory_space<vmem>>, vector<1x32x32xbf16>
    %54 = vector.shape_cast %53 : vector<1x32x32xbf16> to vector<32x32xbf16>
    %c0_26 = arith.constant 0 : index
    %c0_27 = arith.constant 0 : index
    %c0_28 = arith.constant 0 : index
    %55 = vector.load %arg8[%c0_26, %c0_27, %c0_28] : memref<2x1x32xf32, #tpu.memory_space<vmem>>, vector<1x1x32xf32>
    %56 = vector.shape_cast %55 : vector<1x1x32xf32> to vector<1x32xf32>
    %57 = arith.truncf %52 : vector<8x32xf32> to vector<8x32xbf16>
    %cst_29 = arith.constant dense<0.000000e+00> : vector<8x32xf32>
    %58 = tpu.matmul %57, %54, %cst_29 {dimension_numbers = #tpu.dot_dimension_numbers<[1], [0], [0], [1], [0, 0, 1, 1], [], []>} : vector<8x32xbf16>, vector<32x32xbf16>, vector<8x32xf32> -> vector<8x32xf32>
    %59 = vector.broadcast %56 : vector<1x32xf32> to vector<8x32xf32>
    %60 = arith.addf %58, %59 : vector<8x32xf32>
    %c0_30 = arith.constant 0 : index
    %c0_31 = arith.constant 0 : index
    %c0_32 = arith.constant 0 : index
    %61 = vector.load %arg9[%c0_30, %c0_31, %c0_32] : memref<2x32x32xbf16, #tpu.memory_space<vmem>>, vector<1x32x32xbf16>
    %62 = vector.shape_cast %61 : vector<1x32x32xbf16> to vector<32x32xbf16>
    %c0_33 = arith.constant 0 : index
    %c0_34 = arith.constant 0 : index
    %c0_35 = arith.constant 0 : index
    %63 = vector.load %arg10[%c0_33, %c0_34, %c0_35] : memref<2x1x32xf32, #tpu.memory_space<vmem>>, vector<1x1x32xf32>
    %64 = vector.shape_cast %63 : vector<1x1x32xf32> to vector<1x32xf32>
    %65 = arith.truncf %26 : vector<16x32xf32> to vector<16x32xbf16>
    %cst_36 = arith.constant dense<0.000000e+00> : vector<16x32xf32>
    %66 = tpu.matmul %65, %62, %cst_36 {dimension_numbers = #tpu.dot_dimension_numbers<[1], [0], [0], [1], [0, 0, 1, 1], [], []>} : vector<16x32xbf16>, vector<32x32xbf16>, vector<16x32xf32> -> vector<16x32xf32>
    %67 = vector.broadcast %64 : vector<1x32xf32> to vector<16x32xf32>
    %68 = arith.addf %66, %67 : vector<16x32xf32>
    %c0_37 = arith.constant 0 : index
    %c0_38 = arith.constant 0 : index
    %c0_39 = arith.constant 0 : index
    %69 = vector.load %arg11[%c0_37, %c0_38, %c0_39] : memref<2x32x32xbf16, #tpu.memory_space<vmem>>, vector<1x32x32xbf16>
    %70 = vector.shape_cast %69 : vector<1x32x32xbf16> to vector<32x32xbf16>
    %c0_40 = arith.constant 0 : index
    %c0_41 = arith.constant 0 : index
    %c0_42 = arith.constant 0 : index
    %71 = vector.load %arg12[%c0_40, %c0_41, %c0_42] : memref<2x1x32xf32, #tpu.memory_space<vmem>>, vector<1x1x32xf32>
    %72 = vector.shape_cast %71 : vector<1x1x32xf32> to vector<1x32xf32>
    %73 = arith.truncf %26 : vector<16x32xf32> to vector<16x32xbf16>
    %cst_43 = arith.constant dense<0.000000e+00> : vector<16x32xf32>
    %74 = tpu.matmul %73, %70, %cst_43 {dimension_numbers = #tpu.dot_dimension_numbers<[1], [0], [0], [1], [0, 0, 1, 1], [], []>} : vector<16x32xbf16>, vector<32x32xbf16>, vector<16x32xf32> -> vector<16x32xf32>
    %75 = vector.broadcast %72 : vector<1x32xf32> to vector<16x32xf32>
    %76 = arith.addf %74, %75 : vector<16x32xf32>
    %77 = vector.extract_strided_slice %60 {offsets = [0, 0], sizes = [8, 8], strides = [1, 1]} : vector<8x32xf32> to vector<8x8xf32>
    %78 = arith.truncf %77 : vector<8x8xf32> to vector<8x8xbf16>
    %79 = vector.extract_strided_slice %68 {offsets = [0, 0], sizes = [16, 8], strides = [1, 1]} : vector<16x32xf32> to vector<16x8xf32>
    %80 = arith.truncf %79 : vector<16x8xf32> to vector<16x8xbf16>
    %81 = vector.extract_strided_slice %76 {offsets = [0, 0], sizes = [16, 8], strides = [1, 1]} : vector<16x32xf32> to vector<16x8xf32>
    %82 = arith.truncf %81 : vector<16x8xf32> to vector<16x8xbf16>
    %cst_44 = arith.constant dense<0.000000e+00> : vector<8x16xf32>
    %83 = tpu.matmul %78, %80, %cst_44 {dimension_numbers = #tpu.dot_dimension_numbers<[1], [1], [0], [0], [0, 0, 1, 0], [], []>} : vector<8x8xbf16>, vector<16x8xbf16>, vector<8x16xf32> -> vector<8x16xf32>
    %cst_45 = arith.constant 0.353553385 : f32
    %84 = vector.broadcast %cst_45 : f32 to vector<8x16xf32>
    %85 = arith.mulf %83, %84 : vector<8x16xf32>
    %cst_46 = arith.constant dense<0xFF800000> : vector<8xf32>
    %86 = vector.multi_reduction <maximumf>, %85, %cst_46 [1] : vector<8x16xf32> to vector<8xf32>
    %87 = vector.shape_cast %86 : vector<8xf32> to vector<8x1xf32>
    %88 = vector.broadcast %87 : vector<8x1xf32> to vector<8x16xf32>
    %89 = arith.subf %85, %88 : vector<8x16xf32>
    %90 = math.exp %89 : vector<8x16xf32>
    %cst_47 = arith.constant dense<0.000000e+00> : vector<8xf32>
    %91 = vector.multi_reduction <add>, %90, %cst_47 [1] : vector<8x16xf32> to vector<8xf32>
    %92 = vector.shape_cast %91 : vector<8xf32> to vector<8x1xf32>
    %93 = tpu.reciprocal %92 {approx = true} : vector<8x1xf32> -> vector<8x1xf32>
    %94 = vector.broadcast %93 : vector<8x1xf32> to vector<8x16xf32>
    %95 = arith.mulf %90, %94 : vector<8x16xf32>
    %96 = arith.truncf %95 : vector<8x16xf32> to vector<8x16xbf16>
    %cst_48 = arith.constant dense<0.000000e+00> : vector<8x8xf32>
    %97 = tpu.matmul %96, %82, %cst_48 {dimension_numbers = #tpu.dot_dimension_numbers<[1], [0], [0], [1], [0, 0, 1, 1], [], []>} : vector<8x16xbf16>, vector<16x8xbf16>, vector<8x8xf32> -> vector<8x8xf32>
    %98 = vector.extract_strided_slice %60 {offsets = [0, 8], sizes = [8, 8], strides = [1, 1]} : vector<8x32xf32> to vector<8x8xf32>
    %99 = arith.truncf %98 : vector<8x8xf32> to vector<8x8xbf16>
    %100 = vector.extract_strided_slice %68 {offsets = [0, 8], sizes = [16, 8], strides = [1, 1]} : vector<16x32xf32> to vector<16x8xf32>
    %101 = arith.truncf %100 : vector<16x8xf32> to vector<16x8xbf16>
    %102 = vector.extract_strided_slice %76 {offsets = [0, 8], sizes = [16, 8], strides = [1, 1]} : vector<16x32xf32> to vector<16x8xf32>
    %103 = arith.truncf %102 : vector<16x8xf32> to vector<16x8xbf16>
    %cst_49 = arith.constant dense<0.000000e+00> : vector<8x16xf32>
    %104 = tpu.matmul %99, %101, %cst_49 {dimension_numbers = #tpu.dot_dimension_numbers<[1], [1], [0], [0], [0, 0, 1, 0], [], []>} : vector<8x8xbf16>, vector<16x8xbf16>, vector<8x16xf32> -> vector<8x16xf32>
    %cst_50 = arith.constant 0.353553385 : f32
    %105 = vector.broadcast %cst_50 : f32 to vector<8x16xf32>
    %106 = arith.mulf %104, %105 : vector<8x16xf32>
    %cst_51 = arith.constant dense<0xFF800000> : vector<8xf32>
    %107 = vector.multi_reduction <maximumf>, %106, %cst_51 [1] : vector<8x16xf32> to vector<8xf32>
    %108 = vector.shape_cast %107 : vector<8xf32> to vector<8x1xf32>
    %109 = vector.broadcast %108 : vector<8x1xf32> to vector<8x16xf32>
    %110 = arith.subf %106, %109 : vector<8x16xf32>
    %111 = math.exp %110 : vector<8x16xf32>
    %cst_52 = arith.constant dense<0.000000e+00> : vector<8xf32>
    %112 = vector.multi_reduction <add>, %111, %cst_52 [1] : vector<8x16xf32> to vector<8xf32>
    %113 = vector.shape_cast %112 : vector<8xf32> to vector<8x1xf32>
    %114 = tpu.reciprocal %113 {approx = true} : vector<8x1xf32> -> vector<8x1xf32>
    %115 = vector.broadcast %114 : vector<8x1xf32> to vector<8x16xf32>
    %116 = arith.mulf %111, %115 : vector<8x16xf32>
    %117 = arith.truncf %116 : vector<8x16xf32> to vector<8x16xbf16>
    %cst_53 = arith.constant dense<0.000000e+00> : vector<8x8xf32>
    %118 = tpu.matmul %117, %103, %cst_53 {dimension_numbers = #tpu.dot_dimension_numbers<[1], [0], [0], [1], [0, 0, 1, 1], [], []>} : vector<8x16xbf16>, vector<16x8xbf16>, vector<8x8xf32> -> vector<8x8xf32>
    %119 = vector.extract_strided_slice %60 {offsets = [0, 16], sizes = [8, 8], strides = [1, 1]} : vector<8x32xf32> to vector<8x8xf32>
    %120 = arith.truncf %119 : vector<8x8xf32> to vector<8x8xbf16>
    %121 = vector.extract_strided_slice %68 {offsets = [0, 16], sizes = [16, 8], strides = [1, 1]} : vector<16x32xf32> to vector<16x8xf32>
    %122 = arith.truncf %121 : vector<16x8xf32> to vector<16x8xbf16>
    %123 = vector.extract_strided_slice %76 {offsets = [0, 16], sizes = [16, 8], strides = [1, 1]} : vector<16x32xf32> to vector<16x8xf32>
    %124 = arith.truncf %123 : vector<16x8xf32> to vector<16x8xbf16>
    %cst_54 = arith.constant dense<0.000000e+00> : vector<8x16xf32>
    %125 = tpu.matmul %120, %122, %cst_54 {dimension_numbers = #tpu.dot_dimension_numbers<[1], [1], [0], [0], [0, 0, 1, 0], [], []>} : vector<8x8xbf16>, vector<16x8xbf16>, vector<8x16xf32> -> vector<8x16xf32>
    %cst_55 = arith.constant 0.353553385 : f32
    %126 = vector.broadcast %cst_55 : f32 to vector<8x16xf32>
    %127 = arith.mulf %125, %126 : vector<8x16xf32>
    %cst_56 = arith.constant dense<0xFF800000> : vector<8xf32>
    %128 = vector.multi_reduction <maximumf>, %127, %cst_56 [1] : vector<8x16xf32> to vector<8xf32>
    %129 = vector.shape_cast %128 : vector<8xf32> to vector<8x1xf32>
    %130 = vector.broadcast %129 : vector<8x1xf32> to vector<8x16xf32>
    %131 = arith.subf %127, %130 : vector<8x16xf32>
    %132 = math.exp %131 : vector<8x16xf32>
    %cst_57 = arith.constant dense<0.000000e+00> : vector<8xf32>
    %133 = vector.multi_reduction <add>, %132, %cst_57 [1] : vector<8x16xf32> to vector<8xf32>
    %134 = vector.shape_cast %133 : vector<8xf32> to vector<8x1xf32>
    %135 = tpu.reciprocal %134 {approx = true} : vector<8x1xf32> -> vector<8x1xf32>
    %136 = vector.broadcast %135 : vector<8x1xf32> to vector<8x16xf32>
    %137 = arith.mulf %132, %136 : vector<8x16xf32>
    %138 = arith.truncf %137 : vector<8x16xf32> to vector<8x16xbf16>
    %cst_58 = arith.constant dense<0.000000e+00> : vector<8x8xf32>
    %139 = tpu.matmul %138, %124, %cst_58 {dimension_numbers = #tpu.dot_dimension_numbers<[1], [0], [0], [1], [0, 0, 1, 1], [], []>} : vector<8x16xbf16>, vector<16x8xbf16>, vector<8x8xf32> -> vector<8x8xf32>
    %140 = vector.extract_strided_slice %60 {offsets = [0, 24], sizes = [8, 8], strides = [1, 1]} : vector<8x32xf32> to vector<8x8xf32>
    %141 = arith.truncf %140 : vector<8x8xf32> to vector<8x8xbf16>
    %142 = vector.extract_strided_slice %68 {offsets = [0, 24], sizes = [16, 8], strides = [1, 1]} : vector<16x32xf32> to vector<16x8xf32>
    %143 = arith.truncf %142 : vector<16x8xf32> to vector<16x8xbf16>
    %144 = vector.extract_strided_slice %76 {offsets = [0, 24], sizes = [16, 8], strides = [1, 1]} : vector<16x32xf32> to vector<16x8xf32>
    %145 = arith.truncf %144 : vector<16x8xf32> to vector<16x8xbf16>
    %cst_59 = arith.constant dense<0.000000e+00> : vector<8x16xf32>
    %146 = tpu.matmul %141, %143, %cst_59 {dimension_numbers = #tpu.dot_dimension_numbers<[1], [1], [0], [0], [0, 0, 1, 0], [], []>} : vector<8x8xbf16>, vector<16x8xbf16>, vector<8x16xf32> -> vector<8x16xf32>
    %cst_60 = arith.constant 0.353553385 : f32
    %147 = vector.broadcast %cst_60 : f32 to vector<8x16xf32>
    %148 = arith.mulf %146, %147 : vector<8x16xf32>
    %cst_61 = arith.constant dense<0xFF800000> : vector<8xf32>
    %149 = vector.multi_reduction <maximumf>, %148, %cst_61 [1] : vector<8x16xf32> to vector<8xf32>
    %150 = vector.shape_cast %149 : vector<8xf32> to vector<8x1xf32>
    %151 = vector.broadcast %150 : vector<8x1xf32> to vector<8x16xf32>
    %152 = arith.subf %148, %151 : vector<8x16xf32>
    %153 = math.exp %152 : vector<8x16xf32>
    %cst_62 = arith.constant dense<0.000000e+00> : vector<8xf32>
    %154 = vector.multi_reduction <add>, %153, %cst_62 [1] : vector<8x16xf32> to vector<8xf32>
    %155 = vector.shape_cast %154 : vector<8xf32> to vector<8x1xf32>
    %156 = tpu.reciprocal %155 {approx = true} : vector<8x1xf32> -> vector<8x1xf32>
    %157 = vector.broadcast %156 : vector<8x1xf32> to vector<8x16xf32>
    %158 = arith.mulf %153, %157 : vector<8x16xf32>
    %159 = arith.truncf %158 : vector<8x16xf32> to vector<8x16xbf16>
    %cst_63 = arith.constant dense<0.000000e+00> : vector<8x8xf32>
    %160 = tpu.matmul %159, %145, %cst_63 {dimension_numbers = #tpu.dot_dimension_numbers<[1], [0], [0], [1], [0, 0, 1, 1], [], []>} : vector<8x16xbf16>, vector<16x8xbf16>, vector<8x8xf32> -> vector<8x8xf32>
    %161 = tpu.concatenate %97, %118, %139, %160 in 1 : vector<8x8xf32>, vector<8x8xf32>, vector<8x8xf32>, vector<8x8xf32> -> vector<8x32xf32>
    %c0_64 = arith.constant 0 : index
    %c0_65 = arith.constant 0 : index
    %c0_66 = arith.constant 0 : index
    %162 = vector.load %arg13[%c0_64, %c0_65, %c0_66] : memref<2x32x32xbf16, #tpu.memory_space<vmem>>, vector<1x32x32xbf16>
    %163 = vector.shape_cast %162 : vector<1x32x32xbf16> to vector<32x32xbf16>
    %c0_67 = arith.constant 0 : index
    %c0_68 = arith.constant 0 : index
    %c0_69 = arith.constant 0 : index
    %164 = vector.load %arg14[%c0_67, %c0_68, %c0_69] : memref<2x1x32xf32, #tpu.memory_space<vmem>>, vector<1x1x32xf32>
    %165 = vector.shape_cast %164 : vector<1x1x32xf32> to vector<1x32xf32>
    %166 = arith.truncf %161 : vector<8x32xf32> to vector<8x32xbf16>
    %cst_70 = arith.constant dense<0.000000e+00> : vector<8x32xf32>
    %167 = tpu.matmul %166, %163, %cst_70 {dimension_numbers = #tpu.dot_dimension_numbers<[1], [0], [0], [1], [0, 0, 1, 1], [], []>} : vector<8x32xbf16>, vector<32x32xbf16>, vector<8x32xf32> -> vector<8x32xf32>
    %168 = vector.broadcast %165 : vector<1x32xf32> to vector<8x32xf32>
    %169 = arith.addf %167, %168 : vector<8x32xf32>
    %170 = arith.addf %2, %169 : vector<8x32xf32>
    %c0_71 = arith.constant 0 : index
    %c0_72 = arith.constant 0 : index
    %c0_73 = arith.constant 0 : index
    %171 = vector.load %arg15[%c0_71, %c0_72, %c0_73] : memref<2x1x32xf32, #tpu.memory_space<vmem>>, vector<1x1x32xf32>
    %172 = vector.shape_cast %171 : vector<1x1x32xf32> to vector<1x32xf32>
    %c0_74 = arith.constant 0 : index
    %c0_75 = arith.constant 0 : index
    %c0_76 = arith.constant 0 : index
    %173 = vector.load %arg16[%c0_74, %c0_75, %c0_76] : memref<2x1x32xf32, #tpu.memory_space<vmem>>, vector<1x1x32xf32>
    %174 = vector.shape_cast %173 : vector<1x1x32xf32> to vector<1x32xf32>
    %cst_77 = arith.constant dense<0.000000e+00> : vector<8xf32>
    %175 = vector.multi_reduction <add>, %170, %cst_77 [1] : vector<8x32xf32> to vector<8xf32>
    %176 = vector.shape_cast %175 : vector<8xf32> to vector<8x1xf32>
    %cst_78 = arith.constant 3.200000e+01 : f32
    %177 = vector.broadcast %cst_78 : f32 to vector<8x1xf32>
    %178 = arith.divf %176, %177 : vector<8x1xf32>
    %179 = vector.broadcast %178 : vector<8x1xf32> to vector<8x32xf32>
    %180 = arith.subf %170, %179 : vector<8x32xf32>
    %181 = arith.mulf %180, %180 : vector<8x32xf32>
    %cst_79 = arith.constant dense<0.000000e+00> : vector<8xf32>
    %182 = vector.multi_reduction <add>, %181, %cst_79 [1] : vector<8x32xf32> to vector<8xf32>
    %183 = vector.shape_cast %182 : vector<8xf32> to vector<8x1xf32>
    %cst_80 = arith.constant 3.200000e+01 : f32
    %184 = vector.broadcast %cst_80 : f32 to vector<8x1xf32>
    %185 = arith.divf %183, %184 : vector<8x1xf32>
    %186 = vector.broadcast %178 : vector<8x1xf32> to vector<8x32xf32>
    %187 = arith.subf %170, %186 : vector<8x32xf32>
    %cst_81 = arith.constant 9.99999974E-6 : f32
    %188 = vector.broadcast %cst_81 : f32 to vector<8x1xf32>
    %189 = arith.addf %185, %188 : vector<8x1xf32>
    %190 = math.rsqrt %189 : vector<8x1xf32>
    %191 = vector.broadcast %190 : vector<8x1xf32> to vector<8x32xf32>
    %192 = arith.mulf %187, %191 : vector<8x32xf32>
    %193 = vector.broadcast %172 : vector<1x32xf32> to vector<8x32xf32>
    %194 = arith.mulf %192, %193 : vector<8x32xf32>
    %195 = vector.broadcast %174 : vector<1x32xf32> to vector<8x32xf32>
    %196 = arith.addf %194, %195 : vector<8x32xf32>
    %c0_82 = arith.constant 0 : index
    %c0_83 = arith.constant 0 : index
    %c0_84 = arith.constant 0 : index
    %197 = vector.load %arg17[%c0_82, %c0_83, %c0_84] : memref<2x32x128xbf16, #tpu.memory_space<vmem>>, vector<1x32x128xbf16>
    %198 = vector.shape_cast %197 : vector<1x32x128xbf16> to vector<32x128xbf16>
    %c0_85 = arith.constant 0 : index
    %c0_86 = arith.constant 0 : index
    %c0_87 = arith.constant 0 : index
    %199 = vector.load %arg18[%c0_85, %c0_86, %c0_87] : memref<2x1x128xf32, #tpu.memory_space<vmem>>, vector<1x1x128xf32>
    %200 = vector.shape_cast %199 : vector<1x1x128xf32> to vector<1x128xf32>
    %201 = arith.truncf %196 : vector<8x32xf32> to vector<8x32xbf16>
    %cst_88 = arith.constant dense<0.000000e+00> : vector<8x128xf32>
    %202 = tpu.matmul %201, %198, %cst_88 {dimension_numbers = #tpu.dot_dimension_numbers<[1], [0], [0], [1], [0, 0, 1, 1], [], []>} : vector<8x32xbf16>, vector<32x128xbf16>, vector<8x128xf32> -> vector<8x128xf32>
    %203 = vector.broadcast %200 : vector<1x128xf32> to vector<8x128xf32>
    %204 = arith.addf %202, %203 : vector<8x128xf32>
    %205 = arith.mulf %204, %204 : vector<8x128xf32>
    %206 = arith.mulf %204, %205 : vector<8x128xf32>
    %cst_89 = arith.constant 4.471500e-02 : f32
    %207 = vector.broadcast %cst_89 : f32 to vector<8x128xf32>
    %208 = arith.mulf %207, %206 : vector<8x128xf32>
    %209 = arith.addf %204, %208 : vector<8x128xf32>
    %cst_90 = arith.constant 0.797884583 : f32
    %210 = vector.broadcast %cst_90 : f32 to vector<8x128xf32>
    %211 = arith.mulf %210, %209 : vector<8x128xf32>
    %212 = math.tanh %211 : vector<8x128xf32>
    %cst_91 = arith.constant 1.000000e+00 : f32
    %213 = vector.broadcast %cst_91 : f32 to vector<8x128xf32>
    %214 = arith.addf %213, %212 : vector<8x128xf32>
    %cst_92 = arith.constant 5.000000e-01 : f32
    %215 = vector.broadcast %cst_92 : f32 to vector<8x128xf32>
    %216 = arith.mulf %215, %214 : vector<8x128xf32>
    %217 = arith.mulf %204, %216 : vector<8x128xf32>
    %c0_93 = arith.constant 0 : index
    %c0_94 = arith.constant 0 : index
    %c0_95 = arith.constant 0 : index
    %218 = vector.load %arg19[%c0_93, %c0_94, %c0_95] : memref<2x128x32xbf16, #tpu.memory_space<vmem>>, vector<1x128x32xbf16>
    %219 = vector.shape_cast %218 : vector<1x128x32xbf16> to vector<128x32xbf16>
    %c0_96 = arith.constant 0 : index
    %c0_97 = arith.constant 0 : index
    %c0_98 = arith.constant 0 : index
    %220 = vector.load %arg20[%c0_96, %c0_97, %c0_98] : memref<2x1x32xf32, #tpu.memory_space<vmem>>, vector<1x1x32xf32>
    %221 = vector.shape_cast %220 : vector<1x1x32xf32> to vector<1x32xf32>
    %222 = arith.truncf %217 : vector<8x128xf32> to vector<8x128xbf16>
    %cst_99 = arith.constant dense<0.000000e+00> : vector<8x32xf32>
    %223 = tpu.matmul %222, %219, %cst_99 {dimension_numbers = #tpu.dot_dimension_numbers<[1], [0], [0], [1], [0, 0, 1, 1], [], []>} : vector<8x128xbf16>, vector<128x32xbf16>, vector<8x32xf32> -> vector<8x32xf32>
    %224 = vector.broadcast %221 : vector<1x32xf32> to vector<8x32xf32>
    %225 = arith.addf %223, %224 : vector<8x32xf32>
    %226 = arith.addf %170, %225 : vector<8x32xf32>
    %c1 = arith.constant 1 : index
    %c0_100 = arith.constant 0 : index
    %c0_101 = arith.constant 0 : index
    %227 = vector.load %arg5[%c1, %c0_100, %c0_101] : memref<2x1x32xf32, #tpu.memory_space<vmem>>, vector<1x1x32xf32>
    %228 = vector.shape_cast %227 : vector<1x1x32xf32> to vector<1x32xf32>
    %c1_102 = arith.constant 1 : index
    %c0_103 = arith.constant 0 : index
    %c0_104 = arith.constant 0 : index
    %229 = vector.load %arg6[%c1_102, %c0_103, %c0_104] : memref<2x1x32xf32, #tpu.memory_space<vmem>>, vector<1x1x32xf32>
    %230 = vector.shape_cast %229 : vector<1x1x32xf32> to vector<1x32xf32>
    %cst_105 = arith.constant dense<0.000000e+00> : vector<8xf32>
    %231 = vector.multi_reduction <add>, %226, %cst_105 [1] : vector<8x32xf32> to vector<8xf32>
    %232 = vector.shape_cast %231 : vector<8xf32> to vector<8x1xf32>
    %cst_106 = arith.constant 3.200000e+01 : f32
    %233 = vector.broadcast %cst_106 : f32 to vector<8x1xf32>
    %234 = arith.divf %232, %233 : vector<8x1xf32>
    %235 = vector.broadcast %234 : vector<8x1xf32> to vector<8x32xf32>
    %236 = arith.subf %226, %235 : vector<8x32xf32>
    %237 = arith.mulf %236, %236 : vector<8x32xf32>
    %cst_107 = arith.constant dense<0.000000e+00> : vector<8xf32>
    %238 = vector.multi_reduction <add>, %237, %cst_107 [1] : vector<8x32xf32> to vector<8xf32>
    %239 = vector.shape_cast %238 : vector<8xf32> to vector<8x1xf32>
    %cst_108 = arith.constant 3.200000e+01 : f32
    %240 = vector.broadcast %cst_108 : f32 to vector<8x1xf32>
    %241 = arith.divf %239, %240 : vector<8x1xf32>
    %242 = vector.broadcast %234 : vector<8x1xf32> to vector<8x32xf32>
    %243 = arith.subf %226, %242 : vector<8x32xf32>
    %cst_109 = arith.constant 9.99999974E-6 : f32
    %244 = vector.broadcast %cst_109 : f32 to vector<8x1xf32>
    %245 = arith.addf %241, %244 : vector<8x1xf32>
    %246 = math.rsqrt %245 : vector<8x1xf32>
    %247 = vector.broadcast %246 : vector<8x1xf32> to vector<8x32xf32>
    %248 = arith.mulf %243, %247 : vector<8x32xf32>
    %249 = vector.broadcast %228 : vector<1x32xf32> to vector<8x32xf32>
    %250 = arith.mulf %248, %249 : vector<8x32xf32>
    %251 = vector.broadcast %230 : vector<1x32xf32> to vector<8x32xf32>
    %252 = arith.addf %250, %251 : vector<8x32xf32>
    %c1_110 = arith.constant 1 : index
    %c0_111 = arith.constant 0 : index
    %c0_112 = arith.constant 0 : index
    %253 = vector.load %arg7[%c1_110, %c0_111, %c0_112] : memref<2x32x32xbf16, #tpu.memory_space<vmem>>, vector<1x32x32xbf16>
    %254 = vector.shape_cast %253 : vector<1x32x32xbf16> to vector<32x32xbf16>
    %c1_113 = arith.constant 1 : index
    %c0_114 = arith.constant 0 : index
    %c0_115 = arith.constant 0 : index
    %255 = vector.load %arg8[%c1_113, %c0_114, %c0_115] : memref<2x1x32xf32, #tpu.memory_space<vmem>>, vector<1x1x32xf32>
    %256 = vector.shape_cast %255 : vector<1x1x32xf32> to vector<1x32xf32>
    %257 = arith.truncf %252 : vector<8x32xf32> to vector<8x32xbf16>
    %cst_116 = arith.constant dense<0.000000e+00> : vector<8x32xf32>
    %258 = tpu.matmul %257, %254, %cst_116 {dimension_numbers = #tpu.dot_dimension_numbers<[1], [0], [0], [1], [0, 0, 1, 1], [], []>} : vector<8x32xbf16>, vector<32x32xbf16>, vector<8x32xf32> -> vector<8x32xf32>
    %259 = vector.broadcast %256 : vector<1x32xf32> to vector<8x32xf32>
    %260 = arith.addf %258, %259 : vector<8x32xf32>
    %c1_117 = arith.constant 1 : index
    %c0_118 = arith.constant 0 : index
    %c0_119 = arith.constant 0 : index
    %261 = vector.load %arg9[%c1_117, %c0_118, %c0_119] : memref<2x32x32xbf16, #tpu.memory_space<vmem>>, vector<1x32x32xbf16>
    %262 = vector.shape_cast %261 : vector<1x32x32xbf16> to vector<32x32xbf16>
    %c1_120 = arith.constant 1 : index
    %c0_121 = arith.constant 0 : index
    %c0_122 = arith.constant 0 : index
    %263 = vector.load %arg10[%c1_120, %c0_121, %c0_122] : memref<2x1x32xf32, #tpu.memory_space<vmem>>, vector<1x1x32xf32>
    %264 = vector.shape_cast %263 : vector<1x1x32xf32> to vector<1x32xf32>
    %265 = arith.truncf %26 : vector<16x32xf32> to vector<16x32xbf16>
    %cst_123 = arith.constant dense<0.000000e+00> : vector<16x32xf32>
    %266 = tpu.matmul %265, %262, %cst_123 {dimension_numbers = #tpu.dot_dimension_numbers<[1], [0], [0], [1], [0, 0, 1, 1], [], []>} : vector<16x32xbf16>, vector<32x32xbf16>, vector<16x32xf32> -> vector<16x32xf32>
    %267 = vector.broadcast %264 : vector<1x32xf32> to vector<16x32xf32>
    %268 = arith.addf %266, %267 : vector<16x32xf32>
    %c1_124 = arith.constant 1 : index
    %c0_125 = arith.constant 0 : index
    %c0_126 = arith.constant 0 : index
    %269 = vector.load %arg11[%c1_124, %c0_125, %c0_126] : memref<2x32x32xbf16, #tpu.memory_space<vmem>>, vector<1x32x32xbf16>
    %270 = vector.shape_cast %269 : vector<1x32x32xbf16> to vector<32x32xbf16>
    %c1_127 = arith.constant 1 : index
    %c0_128 = arith.constant 0 : index
    %c0_129 = arith.constant 0 : index
    %271 = vector.load %arg12[%c1_127, %c0_128, %c0_129] : memref<2x1x32xf32, #tpu.memory_space<vmem>>, vector<1x1x32xf32>
    %272 = vector.shape_cast %271 : vector<1x1x32xf32> to vector<1x32xf32>
    %273 = arith.truncf %26 : vector<16x32xf32> to vector<16x32xbf16>
    %cst_130 = arith.constant dense<0.000000e+00> : vector<16x32xf32>
    %274 = tpu.matmul %273, %270, %cst_130 {dimension_numbers = #tpu.dot_dimension_numbers<[1], [0], [0], [1], [0, 0, 1, 1], [], []>} : vector<16x32xbf16>, vector<32x32xbf16>, vector<16x32xf32> -> vector<16x32xf32>
    %275 = vector.broadcast %272 : vector<1x32xf32> to vector<16x32xf32>
    %276 = arith.addf %274, %275 : vector<16x32xf32>
    %277 = vector.extract_strided_slice %260 {offsets = [0, 0], sizes = [8, 8], strides = [1, 1]} : vector<8x32xf32> to vector<8x8xf32>
    %278 = arith.truncf %277 : vector<8x8xf32> to vector<8x8xbf16>
    %279 = vector.extract_strided_slice %268 {offsets = [0, 0], sizes = [16, 8], strides = [1, 1]} : vector<16x32xf32> to vector<16x8xf32>
    %280 = arith.truncf %279 : vector<16x8xf32> to vector<16x8xbf16>
    %281 = vector.extract_strided_slice %276 {offsets = [0, 0], sizes = [16, 8], strides = [1, 1]} : vector<16x32xf32> to vector<16x8xf32>
    %282 = arith.truncf %281 : vector<16x8xf32> to vector<16x8xbf16>
    %cst_131 = arith.constant dense<0.000000e+00> : vector<8x16xf32>
    %283 = tpu.matmul %278, %280, %cst_131 {dimension_numbers = #tpu.dot_dimension_numbers<[1], [1], [0], [0], [0, 0, 1, 0], [], []>} : vector<8x8xbf16>, vector<16x8xbf16>, vector<8x16xf32> -> vector<8x16xf32>
    %cst_132 = arith.constant 0.353553385 : f32
    %284 = vector.broadcast %cst_132 : f32 to vector<8x16xf32>
    %285 = arith.mulf %283, %284 : vector<8x16xf32>
    %cst_133 = arith.constant dense<0xFF800000> : vector<8xf32>
    %286 = vector.multi_reduction <maximumf>, %285, %cst_133 [1] : vector<8x16xf32> to vector<8xf32>
    %287 = vector.shape_cast %286 : vector<8xf32> to vector<8x1xf32>
    %288 = vector.broadcast %287 : vector<8x1xf32> to vector<8x16xf32>
    %289 = arith.subf %285, %288 : vector<8x16xf32>
    %290 = math.exp %289 : vector<8x16xf32>
    %cst_134 = arith.constant dense<0.000000e+00> : vector<8xf32>
    %291 = vector.multi_reduction <add>, %290, %cst_134 [1] : vector<8x16xf32> to vector<8xf32>
    %292 = vector.shape_cast %291 : vector<8xf32> to vector<8x1xf32>
    %293 = tpu.reciprocal %292 {approx = true} : vector<8x1xf32> -> vector<8x1xf32>
    %294 = vector.broadcast %293 : vector<8x1xf32> to vector<8x16xf32>
    %295 = arith.mulf %290, %294 : vector<8x16xf32>
    %296 = arith.truncf %295 : vector<8x16xf32> to vector<8x16xbf16>
    %cst_135 = arith.constant dense<0.000000e+00> : vector<8x8xf32>
    %297 = tpu.matmul %296, %282, %cst_135 {dimension_numbers = #tpu.dot_dimension_numbers<[1], [0], [0], [1], [0, 0, 1, 1], [], []>} : vector<8x16xbf16>, vector<16x8xbf16>, vector<8x8xf32> -> vector<8x8xf32>
    %298 = vector.extract_strided_slice %260 {offsets = [0, 8], sizes = [8, 8], strides = [1, 1]} : vector<8x32xf32> to vector<8x8xf32>
    %299 = arith.truncf %298 : vector<8x8xf32> to vector<8x8xbf16>
    %300 = vector.extract_strided_slice %268 {offsets = [0, 8], sizes = [16, 8], strides = [1, 1]} : vector<16x32xf32> to vector<16x8xf32>
    %301 = arith.truncf %300 : vector<16x8xf32> to vector<16x8xbf16>
    %302 = vector.extract_strided_slice %276 {offsets = [0, 8], sizes = [16, 8], strides = [1, 1]} : vector<16x32xf32> to vector<16x8xf32>
    %303 = arith.truncf %302 : vector<16x8xf32> to vector<16x8xbf16>
    %cst_136 = arith.constant dense<0.000000e+00> : vector<8x16xf32>
    %304 = tpu.matmul %299, %301, %cst_136 {dimension_numbers = #tpu.dot_dimension_numbers<[1], [1], [0], [0], [0, 0, 1, 0], [], []>} : vector<8x8xbf16>, vector<16x8xbf16>, vector<8x16xf32> -> vector<8x16xf32>
    %cst_137 = arith.constant 0.353553385 : f32
    %305 = vector.broadcast %cst_137 : f32 to vector<8x16xf32>
    %306 = arith.mulf %304, %305 : vector<8x16xf32>
    %cst_138 = arith.constant dense<0xFF800000> : vector<8xf32>
    %307 = vector.multi_reduction <maximumf>, %306, %cst_138 [1] : vector<8x16xf32> to vector<8xf32>
    %308 = vector.shape_cast %307 : vector<8xf32> to vector<8x1xf32>
    %309 = vector.broadcast %308 : vector<8x1xf32> to vector<8x16xf32>
    %310 = arith.subf %306, %309 : vector<8x16xf32>
    %311 = math.exp %310 : vector<8x16xf32>
    %cst_139 = arith.constant dense<0.000000e+00> : vector<8xf32>
    %312 = vector.multi_reduction <add>, %311, %cst_139 [1] : vector<8x16xf32> to vector<8xf32>
    %313 = vector.shape_cast %312 : vector<8xf32> to vector<8x1xf32>
    %314 = tpu.reciprocal %313 {approx = true} : vector<8x1xf32> -> vector<8x1xf32>
    %315 = vector.broadcast %314 : vector<8x1xf32> to vector<8x16xf32>
    %316 = arith.mulf %311, %315 : vector<8x16xf32>
    %317 = arith.truncf %316 : vector<8x16xf32> to vector<8x16xbf16>
    %cst_140 = arith.constant dense<0.000000e+00> : vector<8x8xf32>
    %318 = tpu.matmul %317, %303, %cst_140 {dimension_numbers = #tpu.dot_dimension_numbers<[1], [0], [0], [1], [0, 0, 1, 1], [], []>} : vector<8x16xbf16>, vector<16x8xbf16>, vector<8x8xf32> -> vector<8x8xf32>
    %319 = vector.extract_strided_slice %260 {offsets = [0, 16], sizes = [8, 8], strides = [1, 1]} : vector<8x32xf32> to vector<8x8xf32>
    %320 = arith.truncf %319 : vector<8x8xf32> to vector<8x8xbf16>
    %321 = vector.extract_strided_slice %268 {offsets = [0, 16], sizes = [16, 8], strides = [1, 1]} : vector<16x32xf32> to vector<16x8xf32>
    %322 = arith.truncf %321 : vector<16x8xf32> to vector<16x8xbf16>
    %323 = vector.extract_strided_slice %276 {offsets = [0, 16], sizes = [16, 8], strides = [1, 1]} : vector<16x32xf32> to vector<16x8xf32>
    %324 = arith.truncf %323 : vector<16x8xf32> to vector<16x8xbf16>
    %cst_141 = arith.constant dense<0.000000e+00> : vector<8x16xf32>
    %325 = tpu.matmul %320, %322, %cst_141 {dimension_numbers = #tpu.dot_dimension_numbers<[1], [1], [0], [0], [0, 0, 1, 0], [], []>} : vector<8x8xbf16>, vector<16x8xbf16>, vector<8x16xf32> -> vector<8x16xf32>
    %cst_142 = arith.constant 0.353553385 : f32
    %326 = vector.broadcast %cst_142 : f32 to vector<8x16xf32>
    %327 = arith.mulf %325, %326 : vector<8x16xf32>
    %cst_143 = arith.constant dense<0xFF800000> : vector<8xf32>
    %328 = vector.multi_reduction <maximumf>, %327, %cst_143 [1] : vector<8x16xf32> to vector<8xf32>
    %329 = vector.shape_cast %328 : vector<8xf32> to vector<8x1xf32>
    %330 = vector.broadcast %329 : vector<8x1xf32> to vector<8x16xf32>
    %331 = arith.subf %327, %330 : vector<8x16xf32>
    %332 = math.exp %331 : vector<8x16xf32>
    %cst_144 = arith.constant dense<0.000000e+00> : vector<8xf32>
    %333 = vector.multi_reduction <add>, %332, %cst_144 [1] : vector<8x16xf32> to vector<8xf32>
    %334 = vector.shape_cast %333 : vector<8xf32> to vector<8x1xf32>
    %335 = tpu.reciprocal %334 {approx = true} : vector<8x1xf32> -> vector<8x1xf32>
    %336 = vector.broadcast %335 : vector<8x1xf32> to vector<8x16xf32>
    %337 = arith.mulf %332, %336 : vector<8x16xf32>
    %338 = arith.truncf %337 : vector<8x16xf32> to vector<8x16xbf16>
    %cst_145 = arith.constant dense<0.000000e+00> : vector<8x8xf32>
    %339 = tpu.matmul %338, %324, %cst_145 {dimension_numbers = #tpu.dot_dimension_numbers<[1], [0], [0], [1], [0, 0, 1, 1], [], []>} : vector<8x16xbf16>, vector<16x8xbf16>, vector<8x8xf32> -> vector<8x8xf32>
    %340 = vector.extract_strided_slice %260 {offsets = [0, 24], sizes = [8, 8], strides = [1, 1]} : vector<8x32xf32> to vector<8x8xf32>
    %341 = arith.truncf %340 : vector<8x8xf32> to vector<8x8xbf16>
    %342 = vector.extract_strided_slice %268 {offsets = [0, 24], sizes = [16, 8], strides = [1, 1]} : vector<16x32xf32> to vector<16x8xf32>
    %343 = arith.truncf %342 : vector<16x8xf32> to vector<16x8xbf16>
    %344 = vector.extract_strided_slice %276 {offsets = [0, 24], sizes = [16, 8], strides = [1, 1]} : vector<16x32xf32> to vector<16x8xf32>
    %345 = arith.truncf %344 : vector<16x8xf32> to vector<16x8xbf16>
    %cst_146 = arith.constant dense<0.000000e+00> : vector<8x16xf32>
    %346 = tpu.matmul %341, %343, %cst_146 {dimension_numbers = #tpu.dot_dimension_numbers<[1], [1], [0], [0], [0, 0, 1, 0], [], []>} : vector<8x8xbf16>, vector<16x8xbf16>, vector<8x16xf32> -> vector<8x16xf32>
    %cst_147 = arith.constant 0.353553385 : f32
    %347 = vector.broadcast %cst_147 : f32 to vector<8x16xf32>
    %348 = arith.mulf %346, %347 : vector<8x16xf32>
    %cst_148 = arith.constant dense<0xFF800000> : vector<8xf32>
    %349 = vector.multi_reduction <maximumf>, %348, %cst_148 [1] : vector<8x16xf32> to vector<8xf32>
    %350 = vector.shape_cast %349 : vector<8xf32> to vector<8x1xf32>
    %351 = vector.broadcast %350 : vector<8x1xf32> to vector<8x16xf32>
    %352 = arith.subf %348, %351 : vector<8x16xf32>
    %353 = math.exp %352 : vector<8x16xf32>
    %cst_149 = arith.constant dense<0.000000e+00> : vector<8xf32>
    %354 = vector.multi_reduction <add>, %353, %cst_149 [1] : vector<8x16xf32> to vector<8xf32>
    %355 = vector.shape_cast %354 : vector<8xf32> to vector<8x1xf32>
    %356 = tpu.reciprocal %355 {approx = true} : vector<8x1xf32> -> vector<8x1xf32>
    %357 = vector.broadcast %356 : vector<8x1xf32> to vector<8x16xf32>
    %358 = arith.mulf %353, %357 : vector<8x16xf32>
    %359 = arith.truncf %358 : vector<8x16xf32> to vector<8x16xbf16>
    %cst_150 = arith.constant dense<0.000000e+00> : vector<8x8xf32>
    %360 = tpu.matmul %359, %345, %cst_150 {dimension_numbers = #tpu.dot_dimension_numbers<[1], [0], [0], [1], [0, 0, 1, 1], [], []>} : vector<8x16xbf16>, vector<16x8xbf16>, vector<8x8xf32> -> vector<8x8xf32>
    %361 = tpu.concatenate %297, %318, %339, %360 in 1 : vector<8x8xf32>, vector<8x8xf32>, vector<8x8xf32>, vector<8x8xf32> -> vector<8x32xf32>
    %c1_151 = arith.constant 1 : index
    %c0_152 = arith.constant 0 : index
    %c0_153 = arith.constant 0 : index
    %362 = vector.load %arg13[%c1_151, %c0_152, %c0_153] : memref<2x32x32xbf16, #tpu.memory_space<vmem>>, vector<1x32x32xbf16>
    %363 = vector.shape_cast %362 : vector<1x32x32xbf16> to vector<32x32xbf16>
    %c1_154 = arith.constant 1 : index
    %c0_155 = arith.constant 0 : index
    %c0_156 = arith.constant 0 : index
    %364 = vector.load %arg14[%c1_154, %c0_155, %c0_156] : memref<2x1x32xf32, #tpu.memory_space<vmem>>, vector<1x1x32xf32>
    %365 = vector.shape_cast %364 : vector<1x1x32xf32> to vector<1x32xf32>
    %366 = arith.truncf %361 : vector<8x32xf32> to vector<8x32xbf16>
    %cst_157 = arith.constant dense<0.000000e+00> : vector<8x32xf32>
    %367 = tpu.matmul %366, %363, %cst_157 {dimension_numbers = #tpu.dot_dimension_numbers<[1], [0], [0], [1], [0, 0, 1, 1], [], []>} : vector<8x32xbf16>, vector<32x32xbf16>, vector<8x32xf32> -> vector<8x32xf32>
    %368 = vector.broadcast %365 : vector<1x32xf32> to vector<8x32xf32>
    %369 = arith.addf %367, %368 : vector<8x32xf32>
    %370 = arith.addf %226, %369 : vector<8x32xf32>
    %c1_158 = arith.constant 1 : index
    %c0_159 = arith.constant 0 : index
    %c0_160 = arith.constant 0 : index
    %371 = vector.load %arg15[%c1_158, %c0_159, %c0_160] : memref<2x1x32xf32, #tpu.memory_space<vmem>>, vector<1x1x32xf32>
    %372 = vector.shape_cast %371 : vector<1x1x32xf32> to vector<1x32xf32>
    %c1_161 = arith.constant 1 : index
    %c0_162 = arith.constant 0 : index
    %c0_163 = arith.constant 0 : index
    %373 = vector.load %arg16[%c1_161, %c0_162, %c0_163] : memref<2x1x32xf32, #tpu.memory_space<vmem>>, vector<1x1x32xf32>
    %374 = vector.shape_cast %373 : vector<1x1x32xf32> to vector<1x32xf32>
    %cst_164 = arith.constant dense<0.000000e+00> : vector<8xf32>
    %375 = vector.multi_reduction <add>, %370, %cst_164 [1] : vector<8x32xf32> to vector<8xf32>
    %376 = vector.shape_cast %375 : vector<8xf32> to vector<8x1xf32>
    %cst_165 = arith.constant 3.200000e+01 : f32
    %377 = vector.broadcast %cst_165 : f32 to vector<8x1xf32>
    %378 = arith.divf %376, %377 : vector<8x1xf32>
    %379 = vector.broadcast %378 : vector<8x1xf32> to vector<8x32xf32>
    %380 = arith.subf %370, %379 : vector<8x32xf32>
    %381 = arith.mulf %380, %380 : vector<8x32xf32>
    %cst_166 = arith.constant dense<0.000000e+00> : vector<8xf32>
    %382 = vector.multi_reduction <add>, %381, %cst_166 [1] : vector<8x32xf32> to vector<8xf32>
    %383 = vector.shape_cast %382 : vector<8xf32> to vector<8x1xf32>
    %cst_167 = arith.constant 3.200000e+01 : f32
    %384 = vector.broadcast %cst_167 : f32 to vector<8x1xf32>
    %385 = arith.divf %383, %384 : vector<8x1xf32>
    %386 = vector.broadcast %378 : vector<8x1xf32> to vector<8x32xf32>
    %387 = arith.subf %370, %386 : vector<8x32xf32>
    %cst_168 = arith.constant 9.99999974E-6 : f32
    %388 = vector.broadcast %cst_168 : f32 to vector<8x1xf32>
    %389 = arith.addf %385, %388 : vector<8x1xf32>
    %390 = math.rsqrt %389 : vector<8x1xf32>
    %391 = vector.broadcast %390 : vector<8x1xf32> to vector<8x32xf32>
    %392 = arith.mulf %387, %391 : vector<8x32xf32>
    %393 = vector.broadcast %372 : vector<1x32xf32> to vector<8x32xf32>
    %394 = arith.mulf %392, %393 : vector<8x32xf32>
    %395 = vector.broadcast %374 : vector<1x32xf32> to vector<8x32xf32>
    %396 = arith.addf %394, %395 : vector<8x32xf32>
    %c1_169 = arith.constant 1 : index
    %c0_170 = arith.constant 0 : index
    %c0_171 = arith.constant 0 : index
    %397 = vector.load %arg17[%c1_169, %c0_170, %c0_171] : memref<2x32x128xbf16, #tpu.memory_space<vmem>>, vector<1x32x128xbf16>
    %398 = vector.shape_cast %397 : vector<1x32x128xbf16> to vector<32x128xbf16>
    %c1_172 = arith.constant 1 : index
    %c0_173 = arith.constant 0 : index
    %c0_174 = arith.constant 0 : index
    %399 = vector.load %arg18[%c1_172, %c0_173, %c0_174] : memref<2x1x128xf32, #tpu.memory_space<vmem>>, vector<1x1x128xf32>
    %400 = vector.shape_cast %399 : vector<1x1x128xf32> to vector<1x128xf32>
    %401 = arith.truncf %396 : vector<8x32xf32> to vector<8x32xbf16>
    %cst_175 = arith.constant dense<0.000000e+00> : vector<8x128xf32>
    %402 = tpu.matmul %401, %398, %cst_175 {dimension_numbers = #tpu.dot_dimension_numbers<[1], [0], [0], [1], [0, 0, 1, 1], [], []>} : vector<8x32xbf16>, vector<32x128xbf16>, vector<8x128xf32> -> vector<8x128xf32>
    %403 = vector.broadcast %400 : vector<1x128xf32> to vector<8x128xf32>
    %404 = arith.addf %402, %403 : vector<8x128xf32>
    %405 = arith.mulf %404, %404 : vector<8x128xf32>
    %406 = arith.mulf %404, %405 : vector<8x128xf32>
    %cst_176 = arith.constant 4.471500e-02 : f32
    %407 = vector.broadcast %cst_176 : f32 to vector<8x128xf32>
    %408 = arith.mulf %407, %406 : vector<8x128xf32>
    %409 = arith.addf %404, %408 : vector<8x128xf32>
    %cst_177 = arith.constant 0.797884583 : f32
    %410 = vector.broadcast %cst_177 : f32 to vector<8x128xf32>
    %411 = arith.mulf %410, %409 : vector<8x128xf32>
    %412 = math.tanh %411 : vector<8x128xf32>
    %cst_178 = arith.constant 1.000000e+00 : f32
    %413 = vector.broadcast %cst_178 : f32 to vector<8x128xf32>
    %414 = arith.addf %413, %412 : vector<8x128xf32>
    %cst_179 = arith.constant 5.000000e-01 : f32
    %415 = vector.broadcast %cst_179 : f32 to vector<8x128xf32>
    %416 = arith.mulf %415, %414 : vector<8x128xf32>
    %417 = arith.mulf %404, %416 : vector<8x128xf32>
    %c1_180 = arith.constant 1 : index
    %c0_181 = arith.constant 0 : index
    %c0_182 = arith.constant 0 : index
    %418 = vector.load %arg19[%c1_180, %c0_181, %c0_182] : memref<2x128x32xbf16, #tpu.memory_space<vmem>>, vector<1x128x32xbf16>
    %419 = vector.shape_cast %418 : vector<1x128x32xbf16> to vector<128x32xbf16>
    %c1_183 = arith.constant 1 : index
    %c0_184 = arith.constant 0 : index
    %c0_185 = arith.constant 0 : index
    %420 = vector.load %arg20[%c1_183, %c0_184, %c0_185] : memref<2x1x32xf32, #tpu.memory_space<vmem>>, vector<1x1x32xf32>
    %421 = vector.shape_cast %420 : vector<1x1x32xf32> to vector<1x32xf32>
    %422 = arith.truncf %417 : vector<8x128xf32> to vector<8x128xbf16>
    %cst_186 = arith.constant dense<0.000000e+00> : vector<8x32xf32>
    %423 = tpu.matmul %422, %419, %cst_186 {dimension_numbers = #tpu.dot_dimension_numbers<[1], [0], [0], [1], [0, 0, 1, 1], [], []>} : vector<8x128xbf16>, vector<128x32xbf16>, vector<8x32xf32> -> vector<8x32xf32>
    %424 = vector.broadcast %421 : vector<1x32xf32> to vector<8x32xf32>
    %425 = arith.addf %423, %424 : vector<8x32xf32>
    %426 = arith.addf %370, %425 : vector<8x32xf32>
    %c0_187 = arith.constant 0 : index
    %c0_188 = arith.constant 0 : index
    %427 = vector.load %arg21[%c0_187, %c0_188] : memref<1x32xf32, #tpu.memory_space<vmem>>, vector<1x32xf32>
    %c0_189 = arith.constant 0 : index
    %c0_190 = arith.constant 0 : index
    %428 = vector.load %arg22[%c0_189, %c0_190] : memref<1x32xf32, #tpu.memory_space<vmem>>, vector<1x32xf32>
    %cst_191 = arith.constant dense<0.000000e+00> : vector<8xf32>
    %429 = vector.multi_reduction <add>, %426, %cst_191 [1] : vector<8x32xf32> to vector<8xf32>
    %430 = vector.shape_cast %429 : vector<8xf32> to vector<8x1xf32>
    %cst_192 = arith.constant 3.200000e+01 : f32
    %431 = vector.broadcast %cst_192 : f32 to vector<8x1xf32>
    %432 = arith.divf %430, %431 : vector<8x1xf32>
    %433 = vector.broadcast %432 : vector<8x1xf32> to vector<8x32xf32>
    %434 = arith.subf %426, %433 : vector<8x32xf32>
    %435 = arith.mulf %434, %434 : vector<8x32xf32>
    %cst_193 = arith.constant dense<0.000000e+00> : vector<8xf32>
    %436 = vector.multi_reduction <add>, %435, %cst_193 [1] : vector<8x32xf32> to vector<8xf32>
    %437 = vector.shape_cast %436 : vector<8xf32> to vector<8x1xf32>
    %cst_194 = arith.constant 3.200000e+01 : f32
    %438 = vector.broadcast %cst_194 : f32 to vector<8x1xf32>
    %439 = arith.divf %437, %438 : vector<8x1xf32>
    %440 = vector.broadcast %432 : vector<8x1xf32> to vector<8x32xf32>
    %441 = arith.subf %426, %440 : vector<8x32xf32>
    %cst_195 = arith.constant 9.99999974E-6 : f32
    %442 = vector.broadcast %cst_195 : f32 to vector<8x1xf32>
    %443 = arith.addf %439, %442 : vector<8x1xf32>
    %444 = math.rsqrt %443 : vector<8x1xf32>
    %445 = vector.broadcast %444 : vector<8x1xf32> to vector<8x32xf32>
    %446 = arith.mulf %441, %445 : vector<8x32xf32>
    %447 = vector.broadcast %427 : vector<1x32xf32> to vector<8x32xf32>
    %448 = arith.mulf %446, %447 : vector<8x32xf32>
    %449 = vector.broadcast %428 : vector<1x32xf32> to vector<8x32xf32>
    %450 = arith.addf %448, %449 : vector<8x32xf32>
    %c0_196 = arith.constant 0 : index
    %c0_197 = arith.constant 0 : index
    %451 = vector.load %arg23[%c0_196, %c0_197] : memref<32x48xbf16, #tpu.memory_space<vmem>>, vector<32x48xbf16>
    %c0_198 = arith.constant 0 : index
    %c0_199 = arith.constant 0 : index
    %452 = vector.load %arg24[%c0_198, %c0_199] : memref<1x48xf32, #tpu.memory_space<vmem>>, vector<1x48xf32>
    %453 = arith.truncf %450 : vector<8x32xf32> to vector<8x32xbf16>
    %cst_200 = arith.constant dense<0.000000e+00> : vector<8x48xf32>
    %454 = tpu.matmul %453, %451, %cst_200 {dimension_numbers = #tpu.dot_dimension_numbers<[1], [0], [0], [1], [0, 0, 1, 1], [], []>} : vector<8x32xbf16>, vector<32x48xbf16>, vector<8x48xf32> -> vector<8x48xf32>
    %455 = vector.broadcast %452 : vector<1x48xf32> to vector<8x48xf32>
    %456 = arith.addf %454, %455 : vector<8x48xf32>
    %cst_201 = arith.constant dense<0.000000e+00> : vector<48xf32>
    %457 = vector.multi_reduction <add>, %456, %cst_201 [0] : vector<8x48xf32> to vector<48xf32>
    %458 = vector.shape_cast %457 : vector<48xf32> to vector<1x48xf32>
    %cst_202 = arith.constant 8.000000e+00 : f32
    %459 = vector.broadcast %cst_202 : f32 to vector<1x48xf32>
    %460 = arith.divf %458, %459 : vector<1x48xf32>
    %c0_203 = arith.constant 0 : index
    %c0_204 = arith.constant 0 : index
    %c0_205 = arith.constant 0 : index
    %461 = vector.load %arg25[%c0_203, %c0_204, %c0_205] : memref<1x1x48xf32, #tpu.memory_space<vmem>>, vector<1x1x48xf32>
    %462 = vector.shape_cast %461 : vector<1x1x48xf32> to vector<1x48xf32>
    %463 = vector.shape_cast %460 : vector<1x48xf32> to vector<1x1x48xf32>
    tpu.vector_store %arg25[%c0_203, %c0_204, %c0_205], %463 {strides = array<i32>} : memref<1x1x48xf32, #tpu.memory_space<vmem>>, vector<1x1x48xf32>,
    return
  }
  func.func @transform_0(%arg0: i32) -> (i32, i32, i32) {
    %c0_i32 = arith.constant 0 : i32
    %c0_i32_0 = arith.constant 0 : i32
    %c0_i32_1 = arith.constant 0 : i32
    return %arg0, %c0_i32, %c0_i32_0 : i32, i32, i32
  }
  func.func @transform_1(%arg0: i32) -> (i32, i32) {
    %c0_i32 = arith.constant 0 : i32
    %c0_i32_0 = arith.constant 0 : i32
    %c0_i32_1 = arith.constant 0 : i32
    return %c0_i32, %c0_i32_0 : i32, i32
  }
  func.func @transform_2(%arg0: i32) -> (i32, i32) {
    %c0_i32 = arith.constant 0 : i32
    %c0_i32_0 = arith.constant 0 : i32
    %c0_i32_1 = arith.constant 0 : i32
    return %c0_i32, %c0_i32_0 : i32, i32
  }
  func.func @transform_3(%arg0: i32) -> (i32, i32) {
    %c0_i32 = arith.constant 0 : i32
    %c0_i32_0 = arith.constant 0 : i32
    %c0_i32_1 = arith.constant 0 : i32
    return %c0_i32, %c0_i32_0 : i32, i32
  }
  func.func @transform_4(%arg0: i32) -> (i32, i32, i32) {
    %c0_i32 = arith.constant 0 : i32
    %c0_i32_0 = arith.constant 0 : i32
    %c0_i32_1 = arith.constant 0 : i32
    %c0_i32_2 = arith.constant 0 : i32
    return %c0_i32, %c0_i32_0, %c0_i32_1 : i32, i32, i32
  }
  func.func @transform_5(%arg0: i32) -> (i32, i32, i32) {
    %c0_i32 = arith.constant 0 : i32
    %c0_i32_0 = arith.constant 0 : i32
    %c0_i32_1 = arith.constant 0 : i32
    %c0_i32_2 = arith.constant 0 : i32
    return %c0_i32, %c0_i32_0, %c0_i32_1 : i32, i32, i32
  }
  func.func @transform_6(%arg0: i32) -> (i32, i32, i32) {
    %c0_i32 = arith.constant 0 : i32
    %c0_i32_0 = arith.constant 0 : i32
    %c0_i32_1 = arith.constant 0 : i32
    %c0_i32_2 = arith.constant 0 : i32
    return %c0_i32, %c0_i32_0, %c0_i32_1 : i32, i32, i32
  }
  func.func @transform_7(%arg0: i32) -> (i32, i32, i32) {
    %c0_i32 = arith.constant 0 : i32
    %c0_i32_0 = arith.constant 0 : i32
    %c0_i32_1 = arith.constant 0 : i32
    %c0_i32_2 = arith.constant 0 : i32
    return %c0_i32, %c0_i32_0, %c0_i32_1 : i32, i32, i32
  }
  func.func @transform_8(%arg0: i32) -> (i32, i32, i32) {
    %c0_i32 = arith.constant 0 : i32
    %c0_i32_0 = arith.constant 0 : i32
    %c0_i32_1 = arith.constant 0 : i32
    %c0_i32_2 = arith.constant 0 : i32
    return %c0_i32, %c0_i32_0, %c0_i32_1 : i32, i32, i32
  }
  func.func @transform_9(%arg0: i32) -> (i32, i32, i32) {
    %c0_i32 = arith.constant 0 : i32
    %c0_i32_0 = arith.constant 0 : i32
    %c0_i32_1 = arith.constant 0 : i32
    %c0_i32_2 = arith.constant 0 : i32
    return %c0_i32, %c0_i32_0, %c0_i32_1 : i32, i32, i32
  }
  func.func @transform_10(%arg0: i32) -> (i32, i32, i32) {
    %c0_i32 = arith.constant 0 : i32
    %c0_i32_0 = arith.constant 0 : i32
    %c0_i32_1 = arith.constant 0 : i32
    %c0_i32_2 = arith.constant 0 : i32
    return %c0_i32, %c0_i32_0, %c0_i32_1 : i32, i32, i32
  }
  func.func @transform_11(%arg0: i32) -> (i32, i32, i32) {
    %c0_i32 = arith.constant 0 : i32
    %c0_i32_0 = arith.constant 0 : i32
    %c0_i32_1 = arith.constant 0 : i32
    %c0_i32_2 = arith.constant 0 : i32
    return %c0_i32, %c0_i32_0, %c0_i32_1 : i32, i32, i32
  }
  func.func @transform_12(%arg0: i32) -> (i32, i32, i32) {
    %c0_i32 = arith.constant 0 : i32
    %c0_i32_0 = arith.constant 0 : i32
    %c0_i32_1 = arith.constant 0 : i32
    %c0_i32_2 = arith.constant 0 : i32
    return %c0_i32, %c0_i32_0, %c0_i32_1 : i32, i32, i32
  }
  func.func @transform_13(%arg0: i32) -> (i32, i32, i32) {
    %c0_i32 = arith.constant 0 : i32
    %c0_i32_0 = arith.constant 0 : i32
    %c0_i32_1 = arith.constant 0 : i32
    %c0_i32_2 = arith.constant 0 : i32
    return %c0_i32, %c0_i32_0, %c0_i32_1 : i32, i32, i32
  }
  func.func @transform_14(%arg0: i32) -> (i32, i32, i32) {
    %c0_i32 = arith.constant 0 : i32
    %c0_i32_0 = arith.constant 0 : i32
    %c0_i32_1 = arith.constant 0 : i32
    %c0_i32_2 = arith.constant 0 : i32
    return %c0_i32, %c0_i32_0, %c0_i32_1 : i32, i32, i32
  }
  func.func @transform_15(%arg0: i32) -> (i32, i32, i32) {
    %c0_i32 = arith.constant 0 : i32
    %c0_i32_0 = arith.constant 0 : i32
    %c0_i32_1 = arith.constant 0 : i32
    %c0_i32_2 = arith.constant 0 : i32
    return %c0_i32, %c0_i32_0, %c0_i32_1 : i32, i32, i32
  }
  func.func @transform_16(%arg0: i32) -> (i32, i32, i32) {
    %c0_i32 = arith.constant 0 : i32
    %c0_i32_0 = arith.constant 0 : i32
    %c0_i32_1 = arith.constant 0 : i32
    %c0_i32_2 = arith.constant 0 : i32
    return %c0_i32, %c0_i32_0, %c0_i32_1 : i32, i32, i32
  }
  func.func @transform_17(%arg0: i32) -> (i32, i32, i32) {
    %c0_i32 = arith.constant 0 : i32
    %c0_i32_0 = arith.constant 0 : i32
    %c0_i32_1 = arith.constant 0 : i32
    %c0_i32_2 = arith.constant 0 : i32
    return %c0_i32, %c0_i32_0, %c0_i32_1 : i32, i32, i32
  }
  func.func @transform_18(%arg0: i32) -> (i32, i32, i32) {
    %c0_i32 = arith.constant 0 : i32
    %c0_i32_0 = arith.constant 0 : i32
    %c0_i32_1 = arith.constant 0 : i32
    %c0_i32_2 = arith.constant 0 : i32
    return %c0_i32, %c0_i32_0, %c0_i32_1 : i32, i32, i32
  }
  func.func @transform_19(%arg0: i32) -> (i32, i32, i32) {
    %c0_i32 = arith.constant 0 : i32
    %c0_i32_0 = arith.constant 0 : i32
    %c0_i32_1 = arith.constant 0 : i32
    %c0_i32_2 = arith.constant 0 : i32
    return %c0_i32, %c0_i32_0, %c0_i32_1 : i32, i32, i32
  }
  func.func @transform_20(%arg0: i32) -> (i32, i32) {
    %c0_i32 = arith.constant 0 : i32
    %c0_i32_0 = arith.constant 0 : i32
    %c0_i32_1 = arith.constant 0 : i32
    return %c0_i32, %c0_i32_0 : i32, i32
  }
  func.func @transform_21(%arg0: i32) -> (i32, i32) {
    %c0_i32 = arith.constant 0 : i32
    %c0_i32_0 = arith.constant 0 : i32
    %c0_i32_1 = arith.constant 0 : i32
    return %c0_i32, %c0_i32_0 : i32, i32
  }
  func.func @transform_22(%arg0: i32) -> (i32, i32) {
    %c0_i32 = arith.constant 0 : i32
    %c0_i32_0 = arith.constant 0 : i32
    %c0_i32_1 = arith.constant 0 : i32
    return %c0_i32, %c0_i32_0 : i32, i32
  }
  func.func @transform_23(%arg0: i32) -> (i32, i32) {
    %c0_i32 = arith.constant 0 : i32
    %c0_i32_0 = arith.constant 0 : i32
    %c0_i32_1 = arith.constant 0 : i32
    return %c0_i32, %c0_i32_0 : i32, i32
  }
  func.func @transform_24(%arg0: i32) -> (i32, i32, i32) {
    %c0_i32 = arith.constant 0 : i32
    %c0_i32_0 = arith.constant 0 : i32
    %c0_i32_1 = arith.constant 0 : i32
    return %arg0, %c0_i32, %c0_i32_0 : i32, i32, i32
  }
}

</mosaic_0001>

<bundles_post_ra>
// kernel: tpu_custom_call.1
= control target key start
LH: loop header
LB: loop body
LE: loop exit
PB: predicated region body
PF: predicated region fallthrough
CT: control target
= control target key end

     0   :  { %s5295_s0 = inlined_call_operand.vmem [shape: f32[2,16,32], index: 0, kind: input, shape index: {}]   ;;  %s5296_s1 = inlined_call_operand.hbm [shape: f32[8,32], index: 1, kind: input, shape index: {}]   ;;  %s5297_s2 = inlined_call_operand.hbm [shape: f32[1,32], index: 2, kind: input, shape index: {}]   ;;  %s5298_s3 = inlined_call_operand.hbm [shape: f32[1,32], index: 3, kind: input, shape index: {}]   ;;  %s5299_s4 = inlined_call_operand.hbm [shape: f32[2,1,32], index: 4, kind: input, shape index: {}]   ;;  %s5300_s5 = inlined_call_operand.hbm [shape: f32[2,1,32], index: 5, kind: input, shape index: {}]   ;;  %s5301_s6 = inlined_call_operand.vmem [shape: bf16[2,32,32], index: 6, kind: input, shape index: {}]   ;;  %s5302_s7 = inlined_call_operand.hbm [shape: f32[2,1,32], index: 7, kind: input, shape index: {}]   ;;  %s5303_s8 = inlined_call_operand.vmem [shape: bf16[2,32,32], index: 8, kind: input, shape index: {}]   ;;  %s5304_s9 = inlined_call_operand.hbm [shape: f32[2,1,32], index: 9, kind: input, shape index: {}]   ;;  %s5305_s10 = inlined_call_operand.vmem [shape: bf16[2,32,32], index: 10, kind: input, shape index: {}]   ;;  %s5306_s11 = inlined_call_operand.hbm [shape: f32[2,1,32], index: 11, kind: input, shape index: {}]   ;;  %s5307_s12 = inlined_call_operand.vmem [shape: bf16[2,32,32], index: 12, kind: input, shape index: {}]   ;;  %s5308_s13 = inlined_call_operand.hbm [shape: f32[2,1,32], index: 13, kind: input, shape index: {}]   ;;  %s5309_s14 = inlined_call_operand.hbm [shape: f32[2,1,32], index: 14, kind: input, shape index: {}]   ;;  %s5310_s15 = inlined_call_operand.hbm [shape: f32[2,1,32], index: 15, kind: input, shape index: {}]   ;;  %s5311_s16 = inlined_call_operand.hbm [shape: bf16[2,32,128], index: 16, kind: input, shape index: {}]   ;;  %s5312_s17 = inlined_call_operand.hbm [shape: f32[2,1,128], index: 17, kind: input, shape index: {}]   ;;  %s5313_s18 = inlined_call_operand.vmem [shape: bf16[2,128,32], index: 18, kind: input, shape index: {}]   ;;  %s5314_s19 = inlined_call_operand.hbm [shape: f32[2,1,32], index: 19, kind: input, shape index: {}]   ;;  %s5315_s20 = inlined_call_operand.vmem [shape: f32[1,32], index: 20, kind: input, shape index: {}]   ;;  %s5316_s21 = inlined_call_operand.vmem [shape: f32[1,32], index: 21, kind: input, shape index: {}]   ;;  %s5317_s22 = inlined_call_operand.hbm [shape: bf16[32,48], index: 22, kind: input, shape index: {}]   ;;  %s5318_s23 = inlined_call_operand.vmem [shape: f32[1,48], index: 23, kind: input, shape index: {}]   ;;  %s5319_s24 = inlined_call_operand.hbm [shape: f32[2,1,48], index: 24, kind: output, shape index: {}]  }
   0x1   :  { %5338 = sst [smem:[#allocation43_spill]] %s5295_s0 }
   0x2   :  { %5339 = sst [smem:[#allocation44_spill]] %s5296_s1 }
   0x3   :  { %5340 = sst [smem:[#allocation45_spill]] %s5297_s2 }
   0x4   :  { %5341 = sst [smem:[#allocation46_spill]] %s5298_s3 }
   0x5   :  { %5342 = sst [smem:[#allocation47_spill]] %s5299_s4 }
   0x6   :  { %5343 = sst [smem:[#allocation48_spill]] %s5300_s5 }
   0x7   :  { %5344 = sst [smem:[#allocation49_spill]] %s5301_s6 }
   0x8   :  { %5345 = sst [smem:[#allocation50_spill]] %s5302_s7 }
   0x9   :  { %5346 = sst [smem:[#allocation51_spill]] %s5303_s8 }
   0xa   :  { %5347 = sst [smem:[#allocation52_spill]] %s5318_s23 }
   0xb   :  { %5348 = sst [smem:[#allocation53_spill]] %s5319_s24 }
   0xc   :  { %29 = vsyncpa [#allocation3], 0 }
   0xd   :  { %30 = vsyncpa [#allocation6], 0 }
   0xe   :  { %31 = vsyncpa [#allocation9], 0 }
   0xf   :  { %32 = vsyncpa [#allocation12], 0 }
  0x10   :  { %33 = vsyncpa [#allocation15], 0 }
  0x11   :  { %34 = vsyncpa [#allocation18], 0 }
  0x12   :  { %35 = vsyncpa [#allocation21], 0 }
  0x13   :  { %36 = vsyncpa [#allocation24], 0 }
  0x14   :  { %37 = vsyncpa [#allocation4], 0 }
  0x15   :  { %39 = vsyncpa [#allocation4 + $0x1], 0  ;;  %s4657_s5 = smov 0   ;;  %s4659_s26 = smov 0  }
  0x16   :  { %s4661_s27 = smov 0   ;;  %s4663_s28 = smov 0  }
  0x17 LB: > { %5349 = sst [smem:[#allocation36_spill]] %s4490_s5  ;;  %s4678_s6 = sadd.s32 4294967295, %s4502_s28   ;;  %s4502_s28 = sphi %s4663_s28, %s5398_s28   ;;  %s4498_s27 = sphi %s4661_s27, %s5400_s27   ;;  %s4494_s26 = sphi %s4659_s26, %s5402_s26   ;;  %s4490_s5 = sphi %s4657_s5, %s5401_s5  }
  0x18   : > { %5350 = sst [smem:[#allocation37_spill]] %s4498_s27  ;;  %s3261_s2 = sadd.s32 4294967294, %s4502_s28  }
  0x19   : > { %5351 = sst [smem:[#allocation38_spill]] %s4502_s28  ;;  %s4682_s29 = sadd.s32 1, %s4502_s28  }
  0x1a   : > { %5352 = sst [smem:[#allocation39_spill]] %s4682_s29  ;;  %s561_s0 = sadd.s32 1, %s4498_s27 }
  0x1b   : > { %s558_s7 = ssub.s32 %s4502_s28, %s4682_s29  ;;  %p571_p0 = scmp.ne.s32.totalorder %s4498_s27, %s4494_s26 }
  0x1c   : > { %p559_p1 = scmp.eq.s32.totalorder %s558_s7, 0  ;;  %p572_p2 = scmp.eq.s32.totalorder %s4678_s6, 1 }
  0x1d   : > { %p577_p3 = scmp.ne.s32.totalorder %s4494_s26, %s4490_s5  ;;  %p578_p4 = scmp.eq.s32.totalorder %s3261_s2, 1 }
  0x1e   : > { %s4693_s30 = scalar_select %p559_p1, %s4498_s27, %s561_s0  }
  0x1f   : > { %p4695_p5 = por %p572_p2, %p571_p0  ;;  %p4699_p6 = por %p578_p4, %p577_p3 }
  0x20   : > { %5353 = sst [smem:[#allocation40_spill]] %s4693_s30  ;;  %p3262_p7 = scmp.ge.s32.totalorder %s4502_s28, 1 }
  0x21   : > { %s5354_s3 = scalar_select %p4695_p5, 1, 0 }
  0x22   : > { %s5356_s25 = scalar_select %p4699_p6, 1, 0 }
  0x23   : > { %5355 = sst [smem:[#allocation41_spill]] %s5354_s3  ;;  %p585_p8 = scmp.lt.s32.totalorder %s4502_s28, 3 }
  0x24   : > { %5357 = sst [smem:[#allocation42_spill]] %s5356_s25  ;;  %p5328_p9 = scmp.eq.s32.totalorder %s4678_s6, 0 }
  0x25   : > { %p4706_p10 = pnand %p3262_p7, %p585_p8  ;;  %s4504_s4 = smov [#allocation5]  }
  0x26   : > { %s609_s1 = sshll.u32 %s4504_s4, 4  ;;  %s4505_s2 = smov [#allocation8]   ;;  %s610_s1 = int_to_ptr.vmem [resolvable:$true] %s609_s1 }
  0x27   : > { %s5358_s8 = scalar_select %p4706_p10, 1, 0 }
  0x28   : > { %p3792_p11 = pneg %p4706_p10  ;;  %s630_s0 = sshll.u32 %s4505_s2, 4  ;;  %s4718_s0 = int_to_ptr.vmem [resolvable:$true] %s630_s0 }
  0x29   : > { %s4506_s30 = smov [#allocation11]   ;;  %s4031_s4 = scalar_lea.vmem %s610_s1, 16 }
  0x2a   : > { %p4714_p12 = pnand %p5328_p9, %p3792_p11  ;;  %s659_s27 = sshll.u32 %s4506_s30, 4  ;;  %s660_s27 = int_to_ptr.vmem [resolvable:$true] %s659_s27 }
  0x2b   : > { %p4032_p0 = scmp.ne.s32.totalorder %s610_s1, %s4031_s4  ;;  %s4038_s2 = scalar_lea.vmem %s610_s1, 32 }
  0x2c   : > { %p4722_p13 = pneg %p4714_p12  ;;  %p4039_p3 = scmp.lt.s32.totalorder %s610_s1, %s610_s1 }
  0x2d   : > { %p4040_p4 = scmp.lt.s32.totalorder %s4038_s2, %s4031_s4 }
  0x2e   : > { %p4034_p1 = pnand %p4032_p0, %p4722_p13 }
  0x2f   : > { %p4041_p7 = por %p4040_p4, %p4039_p3 }
  0x30   : > { %p4035_p2 = pneg %p4034_p1 }
  0x32   : > { %p4042_p8 = pnand %p4041_p7, %p4035_p2 }
  0x34   : > { %4045 = shalt.err (!%p4042_p8)
}
  0x35   : > { %s5361_s5 = sld [smem:[#allocation45_spill]]  ;;  %s4057_s28 = scalar_lea.vmem %s4718_s0, 32 }
  0x36   : > { %p4058_p11 = scmp.ne.s32.totalorder %s4718_s0, %s4057_s28  ;;  %p4065_p9 = scmp.lt.s32.totalorder %s4718_s0, %s4718_s0 }
  0x37   : > { %p4066_p3 = scmp.lt.s32.totalorder %s4057_s28, %s4057_s28 }
  0x38   : > { %p4060_p0 = pnand %p4058_p11, %p4722_p13 }
  0x39   : > { %p4067_p2 = por %p4066_p3, %p4065_p9 }
  0x3a   : > { %p4061_p1 = pneg %p4060_p0 }
  0x3b   : > { %3798 = dma.hbm_to_vmem [thread:$0]  (!%p4714_p12), %s5361_s5, 16, %s610_s1, [#allocation6]  }
  0x3c   : > { %p4068_p4 = pnand %p4067_p2, %p4061_p1 }
  0x3e   : > { %4071 = shalt.err (!%p4068_p4)
}
  0x3f   : > { %s4507_s4 = smov 16   ;;  %s4508_s25 = smov 1  }
  0x40   : > { %s5362_s2 = sld [smem:[#allocation47_spill]]  ;;  %s4083_s30 = scalar_lea.vmem %s660_s27, 32 }
  0x41   : > { %p4084_p7 = scmp.ne.s32.totalorder %s660_s27, %s4083_s30  ;;  %p4091_p11 = scmp.lt.s32.totalorder %s660_s27, %s660_s27 }
  0x42   : > { %p4092_p0 = scmp.lt.s32.totalorder %s4083_s30, %s4083_s30 }
  0x43   : > { %p4086_p9 = pnand %p4084_p7, %p4722_p13 }
  0x44   : > { %p4093_p1 = por %p4092_p0, %p4091_p11 }
  0x45   : > { %p4087_p8 = pneg %p4086_p9 }
  0x46   : > { %3804 = dma.hbm_to_vmem [thread:$0]  (!%p4714_p12), %s5362_s2, 32, %s4718_s0, [#allocation9], %s4507_s4, %s4507_s4, %s4508_s25  }
  0x47   : > { %p4094_p3 = pnand %p4093_p1, %p4087_p8 }
  0x49   : > { %4097 = shalt.err (!%p4094_p3)
}
  0x4a   : > { %s5363_s5 = sld [smem:[#allocation50_spill]]  ;;  %s4509_s0 = smov [#allocation14]  }
  0x4b   : > { %s691_s1 = sshll.u32 %s4509_s0, 4  ;;  %s4510_s2 = smov [#allocation17]   ;;  %s692_s1 = int_to_ptr.vmem [resolvable:$true] %s691_s1 }
  0x4c   : > { %s720_s3 = sshll.u32 %s4510_s2, 4  ;;  %s4109_s23 = scalar_lea.vmem %s692_s1, 32  ;;  %s721_s3 = int_to_ptr.vmem [resolvable:$true] %s720_s3 }
  0x4d   : > { %p4110_p2 = scmp.ne.s32.totalorder %s692_s1, %s4109_s23  ;;  %p4117_p9 = scmp.lt.s32.totalorder %s692_s1, %s692_s1 }
  0x4e   : > { %p4118_p8 = scmp.lt.s32.totalorder %s4109_s23, %s4109_s23 }
  0x4f   : > { %p4112_p4 = pnand %p4110_p2, %p4722_p13 }
  0x50   : > { %3810 = dma.hbm_to_vmem [thread:$0]  (!%p4714_p12), %s5363_s5, 32, %s660_s27, [#allocation12], %s4507_s4, %s4507_s4, %s4508_s25  }
  0x51   : > { %p4113_p7 = pneg %p4112_p4  ;;  %p4119_p11 = por %p4118_p8, %p4117_p9 }
  0x53   : > { %p4120_p0 = pnand %p4119_p11, %p4113_p7 }
  0x55   : > { %4123 = shalt.err (!%p4120_p0)
}
  0x56   : > { %3816 = dma.hbm_to_vmem [thread:$0]  (!%p4714_p12), %s5306_s11, 32, %s692_s1, [#allocation15], %s4507_s4, %s4507_s4, %s4508_s25  }
  0x57   : > { %s4135_s30 = scalar_lea.vmem %s721_s3, 32  ;;  %p4143_p4 = scmp.lt.s32.totalorder %s721_s3, %s721_s3 }
  0x58   : > { %p4136_p1 = scmp.ne.s32.totalorder %s721_s3, %s4135_s30  ;;  %p4144_p9 = scmp.lt.s32.totalorder %s4135_s30, %s4135_s30 }
  0x5a   : > { %p4138_p3 = pnand %p4136_p1, %p4722_p13  ;;  %p4145_p7 = por %p4144_p9, %p4143_p4 }
  0x5c   : > { %p4139_p2 = pneg %p4138_p3 }
  0x5e   : > { %p4146_p8 = pnand %p4145_p7, %p4139_p2 }
  0x60   : > { %4149 = shalt.err (!%p4146_p8)
}
  0x61   : > { %3822 = dma.hbm_to_vmem [thread:$0]  (!%p4714_p12), %s5309_s14, 32, %s721_s3, [#allocation18], %s4507_s4, %s4507_s4, %s4508_s25  }
  0x62   : > { %s4511_s5 = smov [#allocation20]  }
  0x63   : > { %s746_s0 = sshll.u32 %s4511_s5, 4  ;;  %s747_s0 = int_to_ptr.vmem [resolvable:$true] %s746_s0 }
  0x64   : > { %s4161_s1 = scalar_lea.vmem %s747_s0, 512  ;;  %p4169_p3 = scmp.lt.s32.totalorder %s747_s0, %s747_s0 }
  0x65   : > { %p4162_p11 = scmp.ne.s32.totalorder %s747_s0, %s4161_s1  ;;  %p4170_p2 = scmp.lt.s32.totalorder %s4161_s1, %s4161_s1 }
  0x67   : > { %p4164_p0 = pnand %p4162_p11, %p4722_p13  ;;  %p4171_p4 = por %p4170_p2, %p4169_p3 }
  0x69   : > { %p4165_p1 = pneg %p4164_p0 }
  0x6b   : > { %p4172_p9 = pnand %p4171_p4, %p4165_p1 }
  0x6d   : > { %4175 = shalt.err (!%p4172_p9)
}
  0x6e   : > { %s5332_s2 = smov 64   ;;  %s5333_s24 = smov 4  }
  0x6f   : > { %3828 = dma.hbm_to_vmem [thread:$0]  (!%p4714_p12), %s5311_s16, 512, %s747_s0, [#allocation21], %s5332_s2, %s5332_s2, %s5333_s24  }
  0x70   : > { %s4514_s30 = smov [#allocation23]   ;;  %s4515_s28 = smov [#allocation2]  }
  0x71   : > { %s775_s23 = sshll.u32 %s4514_s30, 4  ;;  %s598_s5 = sshll.u32 %s4515_s28, 4  ;;  %s776_s23 = int_to_ptr.vmem [resolvable:$true] %s775_s23  ;;  %s599_s5 = int_to_ptr.vmem [resolvable:$true] %s598_s5 }
  0x72   : > { %s4187_s1 = scalar_lea.vmem %s776_s23, 32  ;;  %p4195_p0 = scmp.lt.s32.totalorder %s776_s23, %s776_s23 }
  0x73   : > { %p4188_p7 = scmp.ne.s32.totalorder %s776_s23, %s4187_s1  ;;  %p4196_p1 = scmp.lt.s32.totalorder %s4187_s1, %s4187_s1 }
  0x75   : > { %p4190_p8 = pnand %p4188_p7, %p4722_p13  ;;  %p4197_p3 = por %p4196_p1, %p4195_p0 }
  0x77   : > { %p4191_p11 = pneg %p4190_p8 }
  0x79   : > { %p4198_p2 = pnand %p4197_p3, %p4191_p11 }
  0x7b   : > { %4201 = shalt.err (!%p4198_p2)
}
  0x7c   : > { %3834 = dma.hbm_to_vmem [thread:$0]  (!%p4714_p12), %s5314_s19, 32, %s776_s23, [#allocation24], %s4507_s4, %s4507_s4, %s4508_s25  }
  0x7d   : > { %s4213_s27 = scalar_lea.vmem %s599_s5, 128  ;;  %p4221_p8 = scmp.lt.s32.totalorder %s599_s5, %s599_s5 }
  0x7e   : > { %p4214_p4 = scmp.ne.s32.totalorder %s599_s5, %s4213_s27  ;;  %p4222_p6 = scmp.lt.s32.totalorder %s4213_s27, %s4213_s27 }
  0x80   : > { %p4216_p9 = pnand %p4214_p4, %p4722_p13  ;;  %p4223_p0 = por %p4222_p6, %p4221_p8 }
  0x82   : > { %p4217_p7 = pneg %p4216_p9 }
  0x84   : > { %p4224_p11 = pnand %p4223_p0, %p4217_p7 }
  0x86   : > { %4227 = shalt.err (!%p4224_p11)
}
  0x87   : > { %s5364_s1 = sld [smem:[#allocation44_spill]]  ;;  %s4516_s0 = smov [#allocation7]  }
  0x88   : > { %s620_s3 = sshll.u32 %s4516_s0, 4  ;;  %s4517_s23 = smov [#allocation10]   ;;  %s621_s3 = int_to_ptr.vmem [resolvable:$true] %s620_s3 }
  0x89   : > { %s643_s2 = sshll.u32 %s4517_s23, 4  ;;  %s4239_s24 = scalar_lea.vmem %s621_s3, 16  ;;  %s644_s2 = int_to_ptr.vmem [resolvable:$true] %s643_s2 }
  0x8a   : > { %p4240_p1 = scmp.ne.s32.totalorder %s621_s3, %s4239_s24  ;;  %s4246_s27 = scalar_lea.vmem %s621_s3, 32 }
  0x8b   : > { %p4247_p2 = scmp.lt.s32.totalorder %s621_s3, %s621_s3  ;;  %p4248_p4 = scmp.lt.s32.totalorder %s4246_s27, %s4239_s24 }
  0x8c   : > { %p4242_p3 = pnand %p4240_p1, %p4722_p13 }
  0x8d   : > { %3795 = dma.hbm_to_vmem [thread:$0]  (!%p4714_p12), %s5364_s1, 128, %s599_s5, [#allocation3]  }
  0x8e   : > { %p4243_p6 = pneg %p4242_p3  ;;  %p4249_p9 = por %p4248_p4, %p4247_p2 }
  0x90   : > { %p4250_p7 = pnand %p4249_p9, %p4243_p6 }
  0x92   : > { %4253 = shalt.err (!%p4250_p7)
}
  0x93   : > { %s5365_s28 = sld [smem:[#allocation46_spill]]  ;;  %s4265_s1 = scalar_lea.vmem %s644_s2, 32 }
  0x94   : > { %p4266_p8 = scmp.ne.s32.totalorder %s644_s2, %s4265_s1  ;;  %p4273_p1 = scmp.lt.s32.totalorder %s644_s2, %s644_s2 }
  0x95   : > { %p4274_p3 = scmp.lt.s32.totalorder %s4265_s1, %s4265_s1 }
  0x96   : > { %p4268_p0 = pnand %p4266_p8, %p4722_p13 }
  0x97   : > { %p4275_p5 = por %p4274_p3, %p4273_p1 }
  0x98   : > { %p4269_p11 = pneg %p4268_p0 }
  0x99   : > { %3801 = dma.hbm_to_vmem [thread:$0]  (!%p4714_p12), %s5365_s28, 16, %s621_s3, [#allocation6]  }
  0x9a   : > { %p4276_p10 = pnand %p4275_p5, %p4269_p11 }
  0x9c   : > { %4279 = shalt.err (!%p4276_p10)
}
  0x9d   : > { %s5366_s23 = sld [smem:[#allocation48_spill]]  ;;  %s4518_s3 = smov [#allocation13]  }
  0x9e   : > { %s675_s27 = sshll.u32 %s4518_s3, 4  ;;  %s4519_s5 = smov [#allocation16]   ;;  %s676_s27 = int_to_ptr.vmem [resolvable:$true] %s675_s27 }
  0x9f   : > { %s707_s30 = sshll.u32 %s4519_s5, 4  ;;  %s4291_s28 = scalar_lea.vmem %s676_s27, 32  ;;  %s708_s30 = int_to_ptr.vmem [resolvable:$true] %s707_s30 }
  0xa0   : > { %p4292_p6 = scmp.ne.s32.totalorder %s676_s27, %s4291_s28  ;;  %p4299_p2 = scmp.lt.s32.totalorder %s676_s27, %s676_s27 }
  0xa1   : > { %p4300_p4 = scmp.lt.s32.totalorder %s4291_s28, %s4291_s28 }
  0xa2   : > { %p4294_p5 = pnand %p4292_p6, %p4722_p13 }
  0xa3   : > { %3807 = dma.hbm_to_vmem [thread:$0]  (!%p4714_p12), %s5366_s23, 32, %s644_s2, [#allocation9], %s4507_s4, %s4507_s4, %s4508_s25  }
  0xa4   : > { %p4295_p10 = pneg %p4294_p5  ;;  %p4301_p9 = por %p4300_p4, %p4299_p2 }
  0xa6   : > { %p4302_p7 = pnand %p4301_p9, %p4295_p10 }
  0xa8   : > { %4305 = shalt.err (!%p4302_p7)
}
  0xa9   : > { %3813 = dma.hbm_to_vmem [thread:$0]  (!%p4714_p12), %s5304_s9, 32, %s676_s27, [#allocation12], %s4507_s4, %s4507_s4, %s4508_s25  }
  0xaa   : > { %s4317_s24 = scalar_lea.vmem %s708_s30, 32  ;;  %p4325_p1 = scmp.lt.s32.totalorder %s708_s30, %s708_s30 }
  0xab   : > { %p4318_p8 = scmp.ne.s32.totalorder %s708_s30, %s4317_s24  ;;  %p4326_p3 = scmp.lt.s32.totalorder %s4317_s24, %s4317_s24 }
  0xad   : > { %p4320_p0 = pnand %p4318_p8, %p4722_p13  ;;  %p4327_p6 = por %p4326_p3, %p4325_p1 }
  0xaf   : > { %p4321_p11 = pneg %p4320_p0 }
  0xb1   : > { %p4328_p5 = pnand %p4327_p6, %p4321_p11 }
  0xb3   : > { %4331 = shalt.err (!%p4328_p5)
}
  0xb4   : > { %3819 = dma.hbm_to_vmem [thread:$0]  (!%p4714_p12), %s5308_s13, 32, %s708_s30, [#allocation15], %s4507_s4, %s4507_s4, %s4508_s25  }
  0xb5   : > { %s4520_s3 = smov [#allocation19]   ;;  %s4521_s5 = smov [#allocation22]  }
  0xb6   : > { %s733_s27 = sshll.u32 %s4520_s3, 4  ;;  %s759_s28 = sshll.u32 %s4521_s5, 4  ;;  %s734_s27 = int_to_ptr.vmem [resolvable:$true] %s733_s27  ;;  %s760_s28 = int_to_ptr.vmem [resolvable:$true] %s759_s28 }
  0xb7   : > { %s4343_s2 = scalar_lea.vmem %s734_s27, 32  ;;  %p4351_p9 = scmp.lt.s32.totalorder %s734_s27, %s734_s27 }
  0xb8   : > { %p4344_p10 = scmp.ne.s32.totalorder %s734_s27, %s4343_s2  ;;  %p4352_p7 = scmp.lt.s32.totalorder %s4343_s2, %s4343_s2 }
  0xba   : > { %p4346_p2 = pnand %p4344_p10, %p4722_p13  ;;  %p4353_p8 = por %p4352_p7, %p4351_p9 }
  0xbc   : > { %p4347_p4 = pneg %p4346_p2 }
  0xbe   : > { %p4354_p0 = pnand %p4353_p8, %p4347_p4 }
  0xc0   : > { %4357 = shalt.err (!%p4354_p0)
}
  0xc1   : > { %3825 = dma.hbm_to_vmem [thread:$0]  (!%p4714_p12), %s5310_s15, 32, %s734_s27, [#allocation18], %s4507_s4, %s4507_s4, %s4508_s25  }
  0xc2   : > { %s4369_s24 = scalar_lea.vmem %s760_s28, 32  ;;  %p4377_p6 = scmp.lt.s32.totalorder %s760_s28, %s760_s28 }
  0xc3   : > { %p4370_p11 = scmp.ne.s32.totalorder %s760_s28, %s4369_s24  ;;  %p4378_p5 = scmp.lt.s32.totalorder %s4369_s24, %s4369_s24 }
  0xc5   : > { %p4372_p1 = pnand %p4370_p11, %p4722_p13  ;;  %p4379_p10 = por %p4378_p5, %p4377_p6 }
  0xc7   : > { %p4373_p3 = pneg %p4372_p1 }
  0xc9   : > { %p4380_p2 = pnand %p4379_p10, %p4373_p3 }
  0xcb   : > { %4383 = shalt.err (!%p4380_p2)
}
  0xcc   : > { %3831 = dma.hbm_to_vmem [thread:$0]  (!%p4714_p12), %s5312_s17, 32, %s760_s28, [#allocation21], %s4507_s4, %s4507_s4, %s4508_s25  }
  0xcd   : > { %s4522_s3 = smov [#allocation25]  }
  0xce   : > { %s794_s27 = sshll.u32 %s4522_s3, 4  ;;  %s795_s27 = int_to_ptr.vmem [resolvable:$true] %s794_s27 }
  0xcf   : > { %s4395_s5 = scalar_lea.vmem %s795_s27, 256  ;;  %p4403_p8 = scmp.lt.s32.totalorder %s795_s27, %s795_s27 }
  0xd0   : > { %p4396_p4 = scmp.ne.s32.totalorder %s795_s27, %s4395_s5  ;;  %p4404_p0 = scmp.lt.s32.totalorder %s4395_s5, %s4395_s5 }
  0xd2   : > { %p4398_p9 = pnand %p4396_p4, %p4722_p13  ;;  %p4405_p11 = por %p4404_p0, %p4403_p8 }
  0xd4   : > { %p4399_p7 = pneg %p4398_p9 }
  0xd6   : > { %p4406_p1 = pnand %p4405_p11, %p4399_p7 }
  0xd8   : > { %4409 = shalt.err (!%p4406_p1)
}
  0xd9   : > { %s5367_s2 = smov 4   ;;  %s5368_s30 = smov 64  }
  0xda   : > { %3837 = dma.hbm_to_vmem [thread:$0]  (!%p4714_p12), %s5317_s22, 256, %s795_s27, [#allocation24], %s5368_s30, %s5368_s30, %s5367_s2  }
  0xdb   : > { %p5369_p3 = scmp.ne.s32.totalorder %s5358_s8, 0 }
  0xdc   : > { %p5370_p13 = scmp.eq.s32.totalorder (!%p5369_p3), %s4678_s6, 0 }
  0xdd   : > { %821 = sbr.rel (%p5369_p3) target bundleno = 5676 (0x162c), region = 116 }
  0xe2   : > { %4453 = dma.done.wait (%p5370_p13), [#allocation3], 128   ;;  %p5371_p6 = pmov %p5370_p13 }
  0xe4   : > { %4455 = vsyncadd (%p5371_p6), [#allocation3], 4294967168  ;;  %p5372_p5 = pmov %p5371_p6 }
  0xe6   : > { %4457 = dma.done.wait (%p5372_p5), [#allocation6], 32   ;;  %p5373_p10 = pmov %p5372_p5 }
  0xe7   : > { %p5374_p2 = pmov %p5372_p5 }
  0xe8   : > { %4459 = vsyncadd (%p5373_p10), [#allocation6], 4294967264 }
  0xe9   : > { %4461 = dma.done.wait (%p5374_p2), [#allocation9], 64   ;;  %p5375_p12 = pmov %p5374_p2 }
  0xea   : > { %p5376_p4 = pmov %p5374_p2 }
  0xeb   : > { %4463 = vsyncadd (%p5375_p12), [#allocation9], 4294967232 }
  0xec   : > { %4465 = dma.done.wait (%p5376_p4), [#allocation12], 64   ;;  %p5377_p9 = pmov %p5374_p2 }
  0xed   : > { %p5378_p7 = pmov %p5374_p2 }
  0xee   : > { %4467 = vsyncadd (%p5377_p9), [#allocation12], 4294967232 }
  0xef   : > { %4469 = dma.done.wait (%p5378_p7), [#allocation15], 64   ;;  %p5379_p8 = pmov %p5374_p2 }
  0xf0   : > { %p5380_p0 = pmov %p5374_p2 }
  0xf1   : > { %4471 = vsyncadd (%p5379_p8), [#allocation15], 4294967232 }
  0xf2   : > { %4473 = dma.done.wait (%p5380_p0), [#allocation18], 64   ;;  %p5381_p11 = pmov %p5380_p0 }
  0xf3   : > { %p5382_p1 = pmov %p5380_p0 }
  0xf4   : > { %4475 = vsyncadd (%p5381_p11), [#allocation18], 4294967232 }
  0xf5   : > { %4477 = dma.done.wait (%p5382_p1), [#allocation21], 544   ;;  %p5383_p3 = pmov %p5380_p0 }
  0xf6   : > { %p5384_p13 = pmov %p5380_p0 }
  0xf7   : > { %4479 = vsyncadd (%p5383_p3), [#allocation21], 4294966752 }
  0xf8   : > { %4481 = dma.done.wait (%p5384_p13), [#allocation24], 288   ;;  %p5385_p6 = pmov %p5380_p0 }
  0xf9   : > { %p942_p5 = scmp.lt.s32.totalorder %s4678_s6, 1  ;;  %vm953_vm0 = vcmask 261120   ;;  %s5386_s28 = sld [smem:[#allocation43_spill]]  ;;  %v4911_v0 = vld [vmem:[#allocation2] sm:$0xff]  ;;  %v3934_v22 = vld [vmem:[%s5305_s10 + $0x8] sm:$0xff]   ;;  %v4523_v23 = vmov 0.0  }
  0xfa   : > { %4483 = vsyncadd (%p5385_p6), [#allocation24], 4294967008  ;;  %v999_v3 = vsel %vm953_vm0, %v4911_v0, 0.0  ;;  %s5387_s3 = sld [smem:[#allocation49_spill]]  ;;  %3506 = vmatprep.subr.bf16.mxu1 %v4523_v23  ;;  %3522 = vmatprep.subr.bf16.mxu0 %v4523_v23  ;;  %vm4524_vm1 = vmmov 0   ;;  %v3936_v25 = vld [vmem:[%s5305_s10] sm:$0xff]  }
  0xfb   : > { %s943_s29 = scalar_select %p942_p5, %s4678_s6, 1  ;;  %1000 = vadd.xlane.f32.xlu0 %v999_v3  ;;  %3523 = vmatpush3.bf16.msra.mxu0 %v3934_v22  ;;  %v3299_v36 = vld [vmem:[#allocation8] ss:$0 sm:$0xff]  ;;  %v3300_v38 = vld [vmem:[#allocation10] ss:$0 sm:$0xff]  ;;  %vm1228_vm2 = vcmask 64512  }
  0xfc   : > { %3510 = vmatprep.mubr.msk.bf16.mxu1 %vm4524_vm1, %v4523_v23  ;;  %3524 = vmatprep.subr.bf16.mxu0 %v4523_v23  ;;  %v3297_v41 = vld [vmem:[#allocation5] ss:$0 sm:$0xff]  ;;  %s5388_s7 = sld [smem:[#allocation51_spill]]  ;;  %v3298_v46 = vld [vmem:[#allocation7] ss:$0 sm:$0xff]  ;;  %s4526_s0 = smov 112  }
  0xfd   : > { %s3422_s8 = sshll.u32 %s943_s29, 4  ;;  %3526 = vmatprep.mubr.msk.bf16.mxu0 %vm4524_vm1, %v4523_v23  ;;  %v3301_v55 = vld [vmem:[#allocation11] ss:$0 sm:$0xff]  ;;  %v3309_v63 = vld [vmem:[#allocation14] ss:$0 sm:$0xff]  ;;  %s4527_s23 = smov 104  }
  0xfe   : > { %vm1276_vm3 = vcmask 130048   ;;  %s4528_s2 = smov 8   ;;  %s4529_s30 = smov 16   ;;  %vm1676_vm4 = vcmask 195584   ;;  %vm3036_vm5 = vcmask 392192   ;;  %vm3046_vm6 = vcmask 385024  }
  0xff   : > { %s946_s24 = scalar_lea.vmem %s5386_s28, %s3422_s8  ;;  %3525 = vmatpush3.bf16.msra.mxu0 %v3936_v25  ;;  %s5336_s29 = smov 24  }
 0x100   : > { %v949_v1 = vld [vmem:[%s946_s24 + $0x8] sm:$0xff]  ;;  %v948_v2 = vld [vmem:[%s946_s24] sm:$0xff]  ;;  %3536 = vmatprep.subr.bf16.mxu0 %v4523_v23  ;;  %s4525_s24 = smov 120   ;;  %s5391_s5 = sld [smem:[#allocation41_spill]] }
 0x101   : > { %v957_v4 = vsel %vm953_vm0, %v949_v1, 0.0  ;;  %v954_v5 = vsel %vm953_vm0, %v948_v2, 0.0  ;;  %v3932_v21 = vld [vmem:[%s5387_s3 + $0x8] sm:$0xff]   ;;  %v3933_v24 = vld [vmem:[%s5387_s3] sm:$0xff]   ;;  %s5392_s8 = sld [smem:[#allocation53_spill]] }
 0x102   : > { %958 = vadd.xlane.f32.xlu1 %v957_v4  ;;  %955 = vadd.xlane.f32.xlu0 %v954_v5  ;;  %v3935_v45 = vld [vmem:[%s5388_s7 + $0x8] sm:$0xff]   ;;  %v3937_v53 = vld [vmem:[%s5388_s7] sm:$0xff]   ;;  %v3305_v5 = vld [vmem:[#allocation13] ss:$0 sm:$0xff] }
 0x103   : > { %3507 = vmatpush3.bf16.msra.mxu1 %v3932_v21 }
 0x104   : > { %3508 = vmatprep.subr.bf16.mxu1 %v4523_v23 }
 0x106   : > { %p5393_p2 = scmp.ne.s32.totalorder %s5391_s5, 0 }
 0x107   : > { %3509 = vmatpush3.bf16.msra.mxu1 %v3933_v24 }
 0x108   : > { %3514 = vmatprep.subr.bf16.mxu1 %v4523_v23 }
 0x184   : > { %v1001_v6 = vpop.xlane.xlu0 %1000 }
 0x185   : > { %v1002_v8 = vmul.f32 0.03125, %v1001_v6 }
 0x187   : > { %v1003_v10 = vsub.f32 %v4911_v0, %v1002_v8 }
 0x189   : > { %v1004_v14 = vmul.f32 %v1003_v10, %v1003_v10 }
 0x18b   : > { %v959_v7 = vpop.xlane.xlu1 %958  ;;  %v956_v12 = vpop.xlane.xlu0 %955  ;;  %v1005_v17 = vsel %vm953_vm0, %v1004_v14, 0.0 }
 0x18c   : > { %v962_v9 = vmul.f32 0.03125, %v959_v7  ;;  %v961_v13 = vmul.f32 0.03125, %v956_v12  ;;  %1006 = vadd.xlane.f32.xlu1 %v1005_v17 }
 0x18e   : > { %v964_v11 = vsub.f32 %v949_v1, %v962_v9  ;;  %v963_v16 = vsub.f32 %v948_v2, %v961_v13 }
 0x190   : > { %v966_v15 = vmul.f32 %v964_v11, %v964_v11  ;;  %v965_v19 = vmul.f32 %v963_v16, %v963_v16 }
 0x192   : > { %v970_v18 = vsel %vm953_vm0, %v966_v15, 0.0  ;;  %v967_v20 = vsel %vm953_vm0, %v965_v19, 0.0 }
 0x193   : > { %971 = vadd.xlane.f32.xlu1 %v970_v18  ;;  %968 = vadd.xlane.f32.xlu0 %v967_v20 }
 0x215   : > { %v1007_v26 = vpop.xlane.xlu1 %1006 }
 0x216   : > { %v1008_v27 = vmul.f32 0.03125, %v1007_v26 }
 0x218   : > { %v1009_v28 = vadd.f32 1e-05, %v1008_v27 }
 0x21a   : > { %3970 = vrsqrt.f32 %v1009_v28 }
 0x21c   : > { %v972_v29 = vpop.xlane.xlu1 %971  ;;  %v969_v30 = vpop.xlane.xlu0 %968 }
 0x21d   : > { %v974_v31 = vmul.f32 0.03125, %v972_v29  ;;  %v973_v32 = vmul.f32 0.03125, %v969_v30 }
 0x21f   : > { %v976_v33 = vadd.f32 1e-05, %v974_v31  ;;  %v975_v34 = vadd.f32 1e-05, %v973_v32 }
 0x221   : > { %3972 = vrsqrt.f32 %v976_v33 }
 0x222   : > { %3974 = vrsqrt.f32 %v975_v34 }
 0x227   : > { %v3971_v35 = vpop.eup %3970 }
 0x228   : > { %v1011_v37 = vmul.f32 %v3971_v35, %v1003_v10 }
 0x22a   : > { %v1018_v39 = vmul.f32 %v3299_v36, %v1011_v37 }
 0x22c   : > { %v1025_v43 = vadd.f32 %v3300_v38, %v1018_v39 }
 0x22e   : > { %v3973_v40 = vpop.eup %3972  ;;  %v1031_v48 = vpack.c.bf16 %v1025_v43, %v1025_v43 }
 0x22f   : > { %v3975_v42 = vpop.eup %3974  ;;  %v980_v44 = vmul.f32 %v3973_v40, %v964_v11 }
 0x230   : > { %v979_v47 = vmul.f32 %v3975_v42, %v963_v16  ;;  %3511 = vmatmul.mubr.msk.bf16.vlgmr.msra.gmra.mxu1 %vm953_vm0, %v1031_v48 }
 0x231   : > { %v988_v49 = vmul.f32 %v3297_v41, %v980_v44  ;;  %3515 = vmatpush3.bf16.msra.mxu1 %v3935_v45  ;;  %3518 = vmatprep.mubr.msk.bf16.mxu1 %vm4524_vm1, %v4523_v23 }
 0x232   : > { %v987_v50 = vmul.f32 %v3297_v41, %v979_v47  ;;  %3516 = vmatprep.subr.bf16.mxu1 %v4523_v23 }
 0x233   : > { %v996_v51 = vadd.f32 %v3298_v46, %v988_v49 }
 0x234   : > { %v995_v52 = vadd.f32 %v3298_v46, %v987_v50 }
 0x235   : > { %3517 = vmatpush3.bf16.msra.mxu1 %v3937_v53 }
 0x236   : > { %v4953_v54 = vpack.c.bf16 %v996_v51, %v995_v52  ;;  %3530 = vmatprep.subr.bf16.mxu1 %v4523_v23 }
 0x238   : > { %3527 = vmatmul.mubr.msk.bf16.vlgmr.msra.gmra.mxu0 %vm953_vm0, %v4953_v54  ;;  %3519 = vmatmul.mubr.msk.bf16.vlgmr.msra.gmra.mxu1 %vm953_vm0, %v4953_v54 }
 0x239   : > { %3538 = vmatprep.mubr.msk.bf16.mxu0 %vm4524_vm1, %v4523_v23  ;;  %3532 = vmatprep.mubr.msk.bf16.mxu1 %vm4524_vm1, %v4523_v23 }
 0x2f0   : > { %v1087_v56 = vpop.f32.mrf.mxu1 }
 0x2f1   : > { %v1088_v57 = vadd.f32 %v3301_v55, %v1087_v56 }
 0x2f2   : > { %v3512_v58 = vpop.f32.mrf.mxu1 }
 0x2f3   : > { %v1225_v59 = vpack.c.bf16 %v1088_v57, %v1088_v57 }
 0x2f4   : > { %v1090_v60 = vpop.f32.mrf.mxu1 }
 0x2f5   : > { %1333 = vrot.lane.b32.xlu1 %v1225_v59, %s4525_s24 }
 0x2f6   : > { %v3513_v62 = vpop.f32.mrf.mxu1 }
 0x2f8   : > { %v1218_v61 = vpop.f32.mrf.mxu0  ;;  %v1154_v2 = vpop.f32.mrf.mxu1 }
 0x2f9   : > { %v1219_v4 = vadd.f32 %v3309_v63, %v1218_v61  ;;  %v1155_v11 = vadd.f32 %v3305_v5, %v1154_v2 }
 0x2fa   : > { %v3528_v1 = vpop.f32.mrf.mxu0  ;;  %v3520_v7 = vpop.f32.mrf.mxu1 }
 0x2fc   : > { %v1221_v3 = vpop.f32.mrf.mxu0  ;;  %v1157_v10 = vpop.f32.mrf.mxu1 }
 0x2fd   : > { %v1222_v6 = vadd.f32 %v3309_v63, %v1221_v3  ;;  %v1158_v12 = vadd.f32 %v3305_v5, %v1157_v10 }
 0x2fe   : > { %v3529_v8 = vpop.f32.mrf.mxu0  ;;  %v3521_v13 = vpop.f32.mrf.mxu1 }
 0x2ff   : > { %v4965_v9 = vpack.c.bf16 %v1222_v6, %v1219_v4  ;;  %v1226_v14 = vpack.c.bf16 %v1158_v12, %v1155_v11 }
 0x301   : > { %3537 = vmatpush3.bf16.msra.mxu0 %v4965_v9  ;;  %1446 = vrot.lane.b32.xlu1 %v1226_v14, %s4526_s0  ;;  %v1233_v15 = vsel %vm1228_vm2, %v1226_v14, 0 }
 0x302   : > { %3548 = vmatprep.subr.bf16.mxu0 %v4523_v23  ;;  %1336 = vrot.lane.b32.xlu0 %v1226_v14, %s4525_s24 }
 0x303   : > { %3531 = vmatpush3.bf16.xpose.msra.mxu1 %v1233_v15 }
 0x304   : > { %3542 = vmatprep.subr.bf16.mxu1 %v4523_v23 }
 0x305   : > { %1444 = vrot.lane.b32.xlu1 %v1225_v59, %s4526_s0 }
 0x306   : > { %1555 = vrot.lane.b32.xlu0 %v1226_v14, %s4527_s23 }
 0x309   : > { %1553 = vrot.lane.b32.xlu1 %v1225_v59, %s4527_s23 }
 0x30a   : > { %3533 = vmatmul.mubr.msk.bf16.vlgmr.msra.gmra.mxu1 %vm1228_vm2, %v1225_v59 }
 0x30b   : > { %3544 = vmatprep.mubr.msk.bf16.mxu1 %vm4524_vm1, %v4523_v23 }
 0x367   : > { %v1334_v18 = vpop.permute.xlu1 %1333 }
 0x373   : > { %v1447_v19 = vpop.permute.xlu1 %1446 }
 0x374   : > { %v1337_v16 = vpop.permute.xlu0 %1336  ;;  %v1452_v20 = vsel %vm1228_vm2, %v1447_v19, 0 }
 0x375   : > { %v1342_v17 = vsel %vm1228_vm2, %v1337_v16, 0 }
 0x376   : > { %3543 = vmatpush3.bf16.xpose.msra.mxu1 %v1342_v17 }
 0x377   : > { %3554 = vmatprep.subr.bf16.mxu1 %v4523_v23  ;;  %v1445_v22 = vpop.permute.xlu1 %1444 }
 0x378   : > { %v1556_v21 = vpop.permute.xlu0 %1555 }
 0x379   : > { %v1561_v24 = vsel %vm1228_vm2, %v1556_v21, 0 }
 0x37b   : > { %v1554_v25 = vpop.permute.xlu1 %1553 }
 0x37d   : > { %3545 = vmatmul.mubr.msk.bf16.vlgmr.msra.gmra.mxu1 %vm1228_vm2, %v1334_v18 }
 0x37e   : > { %3555 = vmatpush3.bf16.xpose.msra.mxu1 %v1452_v20  ;;  %3556 = vmatprep.mubr.msk.bf16.mxu1 %vm4524_vm1, %v4523_v23 }
 0x37f   : > { %3566 = vmatprep.subr.bf16.mxu1 %v4523_v23 }
 0x385   : > { %3557 = vmatmul.mubr.msk.bf16.vlgmr.msra.gmra.mxu1 %vm1228_vm2, %v1445_v22 }
 0x386   : > { %3567 = vmatpush3.bf16.xpose.msra.mxu1 %v1561_v24  ;;  %3568 = vmatprep.mubr.msk.bf16.mxu1 %vm4524_vm1, %v4523_v23 }
 0x387   : > { %3578 = vmatprep.subr.bf16.mxu1 %v4523_v23 }
 0x38d   : > { %3569 = vmatmul.mubr.msk.bf16.vlgmr.msra.gmra.mxu1 %vm1228_vm2, %v1554_v25 }
 0x38e   : > { %3582 = vmatprep.mubr.msk.bf16.mxu1 %vm4524_vm1, %v4523_v23 }
 0x3ca   : > { %v1269_v26 = vpop.f32.mrf.mxu1 }
 0x3cb   : > { %v1275_v27 = vmul.f32 0.35355338, %v1269_v26 }
 0x3cc   : > { %v3534_v28 = vpop.f32.mrf.mxu1 }
 0x3cd   : > { %v1277_v29 = vsel %vm1276_vm3, %v1275_v27, -inf }
 0x3ce   : > { %1278 = vmax.xlane.f32.xlu0 %v1277_v29  ;;  %v1272_v30 = vpop.f32.mrf.mxu1 }
 0x3d0   : > { %v3535_v31 = vpop.f32.mrf.mxu1 }
 0x43d   : > { %v1378_v32 = vpop.f32.mrf.mxu1 }
 0x43e   : > { %v1384_v33 = vmul.f32 0.35355338, %v1378_v32  ;;  %v3938_v32 = vld [vmem:[%s5307_s12 + $0x8] sm:$0xff]  }
 0x43f   : > { %v3546_v34 = vpop.f32.mrf.mxu1  ;;  %3579 = vmatpush3.bf16.msra.mxu1 %v3938_v32 }
 0x440   : > { %v1385_v35 = vsel %vm1276_vm3, %v1384_v33, -inf  ;;  %3580 = vmatprep.subr.bf16.mxu1 %v4523_v23 }
 0x441   : > { %1386 = vmax.xlane.f32.xlu1 %v1385_v35  ;;  %v1381_v36 = vpop.f32.mrf.mxu1 }
 0x443   : > { %v3547_v37 = vpop.f32.mrf.mxu1 }
 0x445   : > { %v1488_v38 = vpop.f32.mrf.mxu1 }
 0x446   : > { %v1494_v39 = vmul.f32 0.35355338, %v1488_v38 }
 0x447   : > { %v3558_v40 = vpop.f32.mrf.mxu1 }
 0x448   : > { %v1495_v41 = vsel %vm1276_vm3, %v1494_v39, -inf }
 0x449   : > { %1496 = vmax.xlane.f32.xlu0 %v1495_v41  ;;  %v1491_v42 = vpop.f32.mrf.mxu1  ;;  %v3939_v41 = vld [vmem:[%s5307_s12] sm:$0xff]  }
 0x44a   : > { %3581 = vmatpush3.bf16.msra.mxu1 %v3939_v41 }
 0x44b   : > { %v3559_v43 = vpop.f32.mrf.mxu1  ;;  %3594 = vmatprep.subr.bf16.mxu1 %v4523_v23 }
 0x44d   : > { %v1597_v44 = vpop.f32.mrf.mxu1 }
 0x44e   : > { %v1603_v45 = vmul.f32 0.35355338, %v1597_v44 }
 0x44f   : > { %v3570_v46 = vpop.f32.mrf.mxu1 }
 0x450   : > { %v1604_v47 = vsel %vm1276_vm3, %v1603_v45, -inf }
 0x451   : > { %1605 = vmax.xlane.f32.xlu0 %v1604_v47  ;;  %v1600_v48 = vpop.f32.mrf.mxu1 }
 0x453   : > { %v3571_v49 = vpop.f32.mrf.mxu1 }
 0x457   : > { %v1279_v50 = vpop.xlane.xlu0 %1278 }
 0x458   : > { %v1280_v51 = vsub.f32 %v1275_v27, %v1279_v50 }
 0x45a   : > { %v1281_v52 = vmul.f32 1.442695, %v1280_v51 }
 0x45c   : > { %3976 = vpow2.f32 %v1281_v52 }
 0x469   : > { %v3977_v53 = vpop.eup %3976 }
 0x46a   : > { %v1283_v55 = vsel %vm1276_vm3, %v3977_v53, 0.0 }
 0x46b   : > { %1284 = vadd.xlane.f32.xlu0 %v1283_v55 }
 0x4ca   : > { %v1387_v56 = vpop.xlane.xlu1 %1386 }
 0x4cb   : > { %v1388_v57 = vsub.f32 %v1384_v33, %v1387_v56 }
 0x4cd   : > { %v1389_v58 = vmul.f32 1.442695, %v1388_v57 }
 0x4cf   : > { %3978 = vpow2.f32 %v1389_v58 }
 0x4d2   : > { %v1497_v59 = vpop.xlane.xlu0 %1496 }
 0x4d3   : > { %v1498_v60 = vsub.f32 %v1494_v39, %v1497_v59 }
 0x4d5   : > { %v1499_v61 = vmul.f32 1.442695, %v1498_v60 }
 0x4d7   : > { %3980 = vpow2.f32 %v1499_v61 }
 0x4da   : > { %v1606_v3 = vpop.xlane.xlu0 %1605 }
 0x4db   : > { %v1607_v5 = vsub.f32 %v1603_v45, %v1606_v3 }
 0x4dc   : > { %v3979_v62 = vpop.eup %3978 }
 0x4dd   : > { %v1391_v63 = vsel %vm1276_vm3, %v3979_v62, 0.0  ;;  %v1608_v6 = vmul.f32 1.442695, %v1607_v5  ;;  %v3941_v5 = vld [vmem:[#allocation20] sm:$0xff]  }
 0x4de   : > { %1392 = vadd.xlane.f32.xlu1 %v1391_v63 }
 0x4e4   : > { %v3981_v1 = vpop.eup %3980 }
 0x4e5   : > { %v1501_v2 = vsel %vm1276_vm3, %v3981_v1, 0.0 }
 0x4e6   : > { %1502 = vadd.xlane.f32.xlu0 %v1501_v2 }
 0x4ef   : > { %1507 = vrot.lane.b32.xlu1 %v4965_v9, %s4526_s0 }
 0x4f4   : > { %v1285_v4 = vpop.xlane.xlu0 %1284 }
 0x4f5   : > { %3982 = vrcp.f32 %v1285_v4  ;;  %v3940_v4 = vld [vmem:[#allocation20 + $0x8] sm:$0xff]  }
 0x4f6   : > { %3984 = vpow2.f32 %v1608_v6 }
 0x4fc   : > { %1398 = vrot.lane.b32.xlu0 %v4965_v9, %s4525_s24 }
 0x502   : > { %v3983_v7 = vpop.eup %3982 }
 0x503   : > { %v1287_v8 = vmul.f32 %v3983_v7, %v3977_v53  ;;  %v3985_v11 = vpop.eup %3984  ;;  %v3321_v53 = vld [vmem:[#allocation16] ss:$0 sm:$0xff] }
 0x504   : > { %v1610_v12 = vsel %vm1276_vm3, %v3985_v11, 0.0 }
 0x505   : > { %v1288_v10 = vpack.c.bf16 %v1287_v8, %v1287_v8 }
 0x507   : > { %3539 = vmatmul.mubr.msk.bf16.vlgmr.msra.gmra.mxu0 %vm1276_vm3, %v1288_v10  ;;  %v3325_v10 = vld [vmem:[#allocation17] ss:$0 sm:$0xff] }
 0x508   : > { %3550 = vmatprep.mubr.msk.bf16.mxu0 %vm4524_vm1, %v4523_v23 }
 0x513   : > { %1611 = vadd.xlane.f32.xlu1 %v1610_v12  ;;  %v3326_v12 = vld [vmem:[#allocation19] ss:$0 sm:$0xff] }
 0x524   : > { %1616 = vrot.lane.b32.xlu1 %v4965_v9, %s4527_s23 }
 0x567   : > { %v1393_v13 = vpop.xlane.xlu1 %1392 }
 0x568   : > { %3986 = vrcp.f32 %v1393_v13 }
 0x56b   : > { %v1508_v19 = vpop.permute.xlu1 %1507 }
 0x56f   : > { %v1503_v14 = vpop.xlane.xlu0 %1502 }
 0x570   : > { %3988 = vrcp.f32 %v1503_v14 }
 0x573   : > { %v1399_v15 = vpop.permute.xlu0 %1398 }
 0x574   : > { %3549 = vmatpush3.bf16.msra.mxu0 %v1399_v15 }
 0x575   : > { %v3987_v16 = vpop.eup %3986  ;;  %3560 = vmatprep.subr.bf16.mxu0 %v4523_v23 }
 0x576   : > { %v1395_v17 = vmul.f32 %v3987_v16, %v3979_v62  ;;  %v3942_v16 = vld [vmem:[%s5313_s18 + $0x38] sm:$0xff]  }
 0x578   : > { %v1396_v18 = vpack.c.bf16 %v1395_v17, %v1395_v17  ;;  %v3943_v17 = vld [vmem:[%s5313_s18 + $0x30] sm:$0xff]  }
 0x57a   : > { %3551 = vmatmul.mubr.msk.bf16.vlgmr.msra.gmra.mxu0 %vm1276_vm3, %v1396_v18  ;;  %v3944_v18 = vld [vmem:[%s5313_s18 + $0x28] sm:$0xff]  }
 0x57b   : > { %3561 = vmatpush3.bf16.msra.mxu0 %v1508_v19  ;;  %3562 = vmatprep.mubr.msk.bf16.mxu0 %vm4524_vm1, %v4523_v23  ;;  %v3945_v19 = vld [vmem:[%s5313_s18 + $0x20] sm:$0xff]  }
 0x57c   : > { %3572 = vmatprep.subr.bf16.mxu0 %v4523_v23 }
 0x57d   : > { %v3989_v9 = vpop.eup %3988 }
 0x57e   : > { %v1505_v20 = vmul.f32 %v3989_v9, %v3981_v1  ;;  %v3946_v9 = vld [vmem:[%s5313_s18 + $0x18] sm:$0xff]  }
 0x580   : > { %v1506_v21 = vpack.c.bf16 %v1505_v20, %v1505_v20  ;;  %v3947_v20 = vld [vmem:[%s5313_s18 + $0x10] sm:$0xff]  }
 0x582   : > { %3563 = vmatmul.mubr.msk.bf16.vlgmr.msra.gmra.mxu0 %vm1276_vm3, %v1506_v21  ;;  %v3948_v21 = vld [vmem:[%s5313_s18 + $0x8] sm:$0xff]  }
 0x583   : > { %3574 = vmatprep.mubr.msk.bf16.mxu0 %vm4524_vm1, %v4523_v23 }
 0x59c   : > { %v1612_v22 = vpop.xlane.xlu1 %1611 }
 0x59d   : > { %3990 = vrcp.f32 %v1612_v22  ;;  %v3949_v22 = vld [vmem:[%s5313_s18] sm:$0xff]  }
 0x5a0   : > { %v1617_v24 = vpop.permute.xlu1 %1616 }
 0x5a1   : > { %3573 = vmatpush3.bf16.msra.mxu0 %v1617_v24  ;;  %v3327_v24 = vld [vmem:[#allocation22] ss:$0 sm:$0xff] }
 0x5a2   : > { %3586 = vmatprep.subr.bf16.mxu0 %v4523_v23 }
 0x5aa   : > { %v3991_v25 = vpop.eup %3990 }
 0x5ab   : > { %v1614_v26 = vmul.f32 %v3991_v25, %v3985_v11 }
 0x5ad   : > { %v1615_v27 = vpack.c.bf16 %v1614_v26, %v1614_v26 }
 0x5af   : > { %3575 = vmatmul.mubr.msk.bf16.vlgmr.msra.gmra.mxu0 %vm1276_vm3, %v1615_v27 }
 0x5b0   : > { %3590 = vmatprep.mubr.msk.bf16.mxu0 %vm4524_vm1, %v4523_v23  ;;  %3587 = vmatpush3.bf16.msra.mxu0 %v3940_v4  ;;  %v3953_v4 = vld [vmem:[%s5388_s7 + $0x10] sm:$0xff]  }
 0x5b1   : > { %3588 = vmatprep.subr.bf16.mxu0 %v4523_v23 }
 0x5b4   : > { %3589 = vmatpush3.bf16.msra.mxu0 %v3941_v5  ;;  %v3954_v5 = vld [vmem:[%s5305_s10 + $0x18] sm:$0xff]  }
 0x5b5   : > { %3614 = vmatprep.subr.bf16.mxu0 %v4523_v23 }
 0x5c7   : > { %v1326_v28 = vpop.f32.mrf.mxu0 }
 0x5c9   : > { %v3540_v29 = vpop.f32.mrf.mxu0 }
 0x5cb   : > { %v1329_v30 = vpop.f32.mrf.mxu0 }
 0x5cd   : > { %v3541_v31 = vpop.f32.mrf.mxu0 }
 0x63a   : > { %v1438_v33 = vpop.f32.mrf.mxu0 }
 0x63b   : > { %1663 = vrot.lane.b32.xlu1 %v1438_v33, %s4528_s2 }
 0x63c   : > { %v3552_v34 = vpop.f32.mrf.mxu0 }
 0x63e   : > { %v1441_v35 = vpop.f32.mrf.mxu0 }
 0x640   : > { %v3553_v36 = vpop.f32.mrf.mxu0 }
 0x642   : > { %v1547_v37 = vpop.f32.mrf.mxu0 }
 0x643   : > { %1667 = vrot.lane.b32.xlu0 %v1547_v37, %s4529_s30 }
 0x644   : > { %v3564_v38 = vpop.f32.mrf.mxu0 }
 0x646   : > { %v1550_v39 = vpop.f32.mrf.mxu0 }
 0x648   : > { %v3565_v40 = vpop.f32.mrf.mxu0 }
 0x649   : > { %v3331_v40 = vld [vmem:[#allocation23] ss:$0 sm:$0xff] }
 0x66f   : > { %v1656_v42 = vpop.f32.mrf.mxu0 }
 0x670   : > { %1671 = vrot.lane.b32.xlu1 %v1656_v42, %s5336_s29  ;;  %s5389_s29 = smov 24  }
 0x671   : > { %v3576_v43 = vpop.f32.mrf.mxu0 }
 0x673   : > { %v1659_v44 = vpop.f32.mrf.mxu0 }
 0x675   : > { %v3577_v45 = vpop.f32.mrf.mxu0 }
 0x6ad   : > { %v1664_v46 = vpop.permute.xlu1 %1663 }
 0x6ae   : > { %v1674_v48 = vsel %vm1228_vm2, %v1326_v28, %v1664_v46 }
 0x6b5   : > { %v1668_v47 = vpop.permute.xlu0 %1667 }
 0x6b6   : > { %v1675_v49 = vsel %vm1276_vm3, %v1674_v48, %v1668_v47 }
 0x6e2   : > { %v1672_v50 = vpop.permute.xlu1 %1671 }
 0x6e3   : > { %v1677_v51 = vsel %vm1676_vm4, %v1675_v49, %v1672_v50 }
 0x6e4   : > { %v1683_v52 = vpack.c.bf16 %v1677_v51, %v1677_v51 }
 0x6e6   : > { %3583 = vmatmul.mubr.msk.bf16.vlgmr.msra.gmra.mxu1 %vm953_vm0, %v1683_v52 }
 0x6e7   : > { %3610 = vmatprep.mubr.msk.bf16.mxu1 %vm4524_vm1, %v4523_v23  ;;  %3595 = vmatpush3.bf16.msra.mxu1 %v3942_v16 }
 0x6e8   : > { %3596 = vmatprep.subr.bf16.mxu1 %v4523_v23 }
 0x6eb   : > { %3597 = vmatpush3.bf16.msra.mxu1 %v3943_v17 }
 0x6ec   : > { %3598 = vmatprep.subr.bf16.mxu1 %v4523_v23 }
 0x6ef   : > { %3599 = vmatpush3.bf16.msra.mxu1 %v3944_v18 }
 0x6f0   : > { %3600 = vmatprep.subr.bf16.mxu1 %v4523_v23 }
 0x6f3   : > { %3601 = vmatpush3.bf16.msra.mxu1 %v3945_v19 }
 0x6f4   : > { %3602 = vmatprep.subr.bf16.mxu1 %v4523_v23 }
 0x6f7   : > { %3603 = vmatpush3.bf16.msra.mxu1 %v3946_v9 }
 0x6f8   : > { %3604 = vmatprep.subr.bf16.mxu1 %v4523_v23 }
 0x6fb   : > { %3605 = vmatpush3.bf16.msra.mxu1 %v3947_v20 }
 0x6fc   : > { %3606 = vmatprep.subr.bf16.mxu1 %v4523_v23 }
 0x6ff   : > { %3607 = vmatpush3.bf16.msra.mxu1 %v3948_v21 }
 0x700   : > { %3608 = vmatprep.subr.bf16.mxu1 %v4523_v23 }
 0x703   : > { %3609 = vmatpush3.bf16.msra.mxu1 %v3949_v22  ;;  %v3362_v22 = vld [vmem:[#allocation14 + $0x1] ss:$0 sm:$0xff] }
 0x704   : > { %3644 = vmatprep.subr.bf16.mxu1 %v4523_v23 }
 0x7a6   : > { %v1739_v55 = vpop.f32.mrf.mxu1 }
 0x7a7   : > { %v1740_v56 = vadd.f32 %v3321_v53, %v1739_v55  ;;  %v3950_v53 = vld [vmem:[%s5387_s3 + $0x18] sm:$0xff]   ;;  %v3951_v55 = vld [vmem:[%s5387_s3 + $0x10] sm:$0xff]  }
 0x7a8   : > { %v3584_v57 = vpop.f32.mrf.mxu1 }
 0x7a9   : > { %v5041_v58 = vadd.f32 %v1740_v56, %v4911_v0 }
 0x7aa   : > { %v1742_v59 = vpop.f32.mrf.mxu1 }
 0x7ab   : > { %v1748_v60 = vsel %vm953_vm0, %v5041_v58, 0.0 }
 0x7ac   : > { %1749 = vadd.xlane.f32.xlu0 %v1748_v60  ;;  %v3585_v61 = vpop.f32.mrf.mxu1  ;;  %v3340_v60 = vld [vmem:[#allocation8 + $0x1] ss:$0 sm:$0xff] }
 0x835   : > { %v1750_v62 = vpop.xlane.xlu0 %1749 }
 0x836   : > { %v1751_v63 = vmul.f32 0.03125, %v1750_v62  ;;  %v3341_v62 = vld [vmem:[#allocation10 + $0x1] ss:$0 sm:$0xff] }
 0x838   : > { %v1752_v1 = vsub.f32 %v5041_v58, %v1751_v63 }
 0x83a   : > { %v1753_v2 = vmul.f32 %v1752_v1, %v1752_v1 }
 0x83c   : > { %v1754_v3 = vsel %vm953_vm0, %v1753_v2, 0.0  ;;  %v3952_v2 = vld [vmem:[%s5388_s7 + $0x18] sm:$0xff]  }
 0x83d   : > { %1755 = vadd.xlane.f32.xlu1 %v1754_v3 }
 0x8c6   : > { %v1756_v0 = vpop.xlane.xlu1 %1755 }
 0x8c7   : > { %v1757_v6 = vmul.f32 0.03125, %v1756_v0  ;;  %v3955_v0 = vld [vmem:[%s5305_s10 + $0x10] sm:$0xff]  }
 0x8c9   : > { %v1758_v7 = vadd.f32 1e-05, %v1757_v6  ;;  %v3346_v6 = vld [vmem:[#allocation11 + $0x1] ss:$0 sm:$0xff] }
 0x8cb   : > { %3992 = vrsqrt.f32 %v1758_v7 }
 0x8d8   : > { %v3993_v8 = vpop.eup %3992 }
 0x8d9   : > { %v1760_v11 = vmul.f32 %v3993_v8, %v1752_v1 }
 0x8db   : > { %v1767_v13 = vmul.f32 %v3325_v10, %v1760_v11 }
 0x8dd   : > { %v1774_v14 = vadd.f32 %v3326_v12, %v1767_v13 }
 0x8df   : > { %v1780_v15 = vpack.c.bf16 %v1774_v14, %v1774_v14 }
 0x8e1   : > { %3591 = vmatmul.mubr.msk.bf16.vlgmr.msra.gmra.mxu0 %vm953_vm0, %v1780_v15  ;;  %v3354_v15 = vld [vmem:[#allocation13 + $0x1] ss:$0 sm:$0xff] }
 0x8e2   : > { %3618 = vmatprep.mubr.msk.bf16.mxu0 %vm4524_vm1, %v4523_v23  ;;  %3615 = vmatpush3.bf16.msra.mxu0 %v3950_v53 }
 0x8e3   : > { %3616 = vmatprep.subr.bf16.mxu0 %v4523_v23 }
 0x8e6   : > { %3617 = vmatpush3.bf16.msra.mxu0 %v3951_v55 }
 0x8e7   : > { %3622 = vmatprep.subr.bf16.mxu0 %v4523_v23 }
 0x9a1   : > { %v1836_v25 = vpop.f32.mrf.mxu0 }
 0x9a2   : > { %v1837_v26 = vadd.f32 %v3327_v24, %v1836_v25 }
 0x9a3   : > { %v3592_v27 = vpop.f32.mrf.mxu0 }
 0x9a4   : > { %v1842_v28 = vmul.f32 %v1837_v26, %v1837_v26 }
 0x9a5   : > { %v1839_v29 = vpop.f32.mrf.mxu0 }
 0x9a6   : > { %v1843_v30 = vmul.f32 %v1842_v28, %v1837_v26 }
 0x9a7   : > { %v3593_v31 = vpop.f32.mrf.mxu0 }
 0x9a8   : > { %v1844_v32 = vmul.f32 0.044715, %v1843_v30 }
 0x9aa   : > { %v1845_v33 = vadd.f32 %v1844_v32, %v1837_v26 }
 0x9ac   : > { %v1846_v34 = vmul.f32 0.7978846, %v1845_v33 }
 0x9ae   : > { %3994 = vtanh.f32 %v1846_v34 }
 0x9bb   : > { %v3995_v35 = vpop.eup %3994 }
 0x9bc   : > { %v1848_v36 = vadd.f32 1.0, %v3995_v35 }
 0x9be   : > { %v1849_v37 = vmul.f32 0.5, %v1848_v36 }
 0x9c0   : > { %v1850_v38 = vmul.f32 %v1849_v37, %v1837_v26 }
 0x9c2   : > { %v1868_v39 = vpack.c.bf16 %v1850_v38, %v1850_v38 }
 0x9c4   : > { %3611 = vmatmul.mubr.bf16.vlgmr.msra.gmra.mxu1 %v1868_v39 }
 0x9c5   : > { %3646 = vmatprep.mubr.msk.bf16.mxu1 %vm4524_vm1, %v4523_v23 }
 0xa84   : > { %v1957_v41 = vpop.f32.mrf.mxu1 }
 0xa85   : > { %v1958_v42 = vadd.f32 %v3331_v40, %v1957_v41 }
 0xa86   : > { %v3612_v43 = vpop.f32.mrf.mxu1 }
 0xa87   : > { %v5087_v44 = vadd.f32 %v1958_v42, %v5041_v58 }
 0xa88   : > { %v1960_v45 = vpop.f32.mrf.mxu1 }
 0xa89   : > { %v1968_v46 = vsel %vm953_vm0, %v5087_v44, 0.0 }
 0xa8a   : > { %1969 = vadd.xlane.f32.xlu0 %v1968_v46  ;;  %v3613_v47 = vpop.f32.mrf.mxu1 }
 0xb13   : > { %v1970_v48 = vpop.xlane.xlu0 %1969 }
 0xb14   : > { %v1971_v49 = vmul.f32 0.03125, %v1970_v48 }
 0xb16   : > { %v1972_v50 = vsub.f32 %v5087_v44, %v1971_v49 }
 0xb18   : > { %v1973_v51 = vmul.f32 %v1972_v50, %v1972_v50 }
 0xb1a   : > { %v1974_v52 = vsel %vm953_vm0, %v1973_v51, 0.0 }
 0xb1b   : > { %1975 = vadd.xlane.f32.xlu0 %v1974_v52 }
 0xba4   : > { %v1976_v56 = vpop.xlane.xlu0 %1975 }
 0xba5   : > { %v1977_v57 = vmul.f32 0.03125, %v1976_v56 }
 0xba7   : > { %v1978_v58 = vadd.f32 1e-05, %v1977_v57 }
 0xba9   : > { %3996 = vrsqrt.f32 %v1978_v58 }
 0xbb6   : > { %v3997_v59 = vpop.eup %3996 }
 0xbb7   : > { %v1980_v61 = vmul.f32 %v3997_v59, %v1972_v50 }
 0xbb9   : > { %v1987_v63 = vmul.f32 %v3340_v60, %v1980_v61 }
 0xbbb   : > { %v1994_v1 = vadd.f32 %v3341_v62, %v1987_v63 }
 0xbbd   : > { %v2002_v3 = vpack.c.bf16 %v1994_v1, %v1994_v1 }
 0xbbf   : > { %3619 = vmatmul.mubr.msk.bf16.vlgmr.msra.gmra.mxu0 %vm953_vm0, %v2002_v3 }
 0xbc0   : > { %3623 = vmatpush3.bf16.msra.mxu0 %v3952_v2  ;;  %3626 = vmatprep.mubr.msk.bf16.mxu0 %vm4524_vm1, %v4523_v23 }
 0xbc1   : > { %3624 = vmatprep.subr.bf16.mxu0 %v4523_v23 }
 0xbc4   : > { %3625 = vmatpush3.bf16.msra.mxu0 %v3953_v4 }
 0xbc5   : > { %3630 = vmatprep.subr.bf16.mxu0 %v4523_v23 }
 0xbc7   : > { %3627 = vmatmul.mubr.msk.bf16.vlgmr.msra.gmra.mxu0 %vm953_vm0, %v4953_v54 }
 0xbc8   : > { %3631 = vmatpush3.bf16.msra.mxu0 %v3954_v5  ;;  %3634 = vmatprep.mubr.msk.bf16.mxu0 %vm4524_vm1, %v4523_v23 }
 0xbc9   : > { %3632 = vmatprep.subr.bf16.mxu0 %v4523_v23 }
 0xbcc   : > { %3633 = vmatpush3.bf16.msra.mxu0 %v3955_v0 }
 0xbcd   : > { %3638 = vmatprep.subr.bf16.mxu0 %v4523_v23 }
 0xbcf   : > { %3635 = vmatmul.mubr.msk.bf16.vlgmr.msra.gmra.mxu0 %vm953_vm0, %v4953_v54 }
 0xbd0   : > { %3640 = vmatprep.mubr.msk.bf16.mxu0 %vm4524_vm1, %v4523_v23 }
 0xc7f   : > { %v2058_v7 = vpop.f32.mrf.mxu0 }
 0xc80   : > { %v2059_v8 = vadd.f32 %v3346_v6, %v2058_v7 }
 0xc81   : > { %v3620_v10 = vpop.f32.mrf.mxu0 }
 0xc82   : > { %v2196_v11 = vpack.c.bf16 %v2059_v8, %v2059_v8 }
 0xc83   : > { %v2061_v12 = vpop.f32.mrf.mxu0 }
 0xc84   : > { %2302 = vrot.lane.b32.xlu1 %v2196_v11, %s4525_s24 }
 0xc85   : > { %v3621_v13 = vpop.f32.mrf.mxu0 }
 0xc87   : > { %v2123_v14 = vpop.f32.mrf.mxu0 }
 0xc88   : > { %v2124_v18 = vadd.f32 %v3354_v15, %v2123_v14 }
 0xc89   : > { %v3628_v16 = vpop.f32.mrf.mxu0 }
 0xc8b   : > { %v2126_v17 = vpop.f32.mrf.mxu0 }
 0xc8c   : > { %v2127_v19 = vadd.f32 %v3354_v15, %v2126_v17 }
 0xc8d   : > { %v3629_v9 = vpop.f32.mrf.mxu0 }
 0xc8e   : > { %v2197_v54 = vpack.c.bf16 %v2127_v19, %v2124_v18 }
 0xc8f   : > { %v2189_v20 = vpop.f32.mrf.mxu0 }
 0xc90   : > { %2415 = vrot.lane.b32.xlu1 %v2197_v54, %s4526_s0  ;;  %2305 = vrot.lane.b32.xlu0 %v2197_v54, %s4525_s24  ;;  %v2203_v21 = vsel %vm1228_vm2, %v2197_v54, 0  ;;  %v2190_v26 = vadd.f32 %v3362_v22, %v2189_v20 }
 0xc91   : > { %v3636_v24 = vpop.f32.mrf.mxu0  ;;  %3639 = vmatpush3.bf16.xpose.msra.mxu0 %v2203_v21 }
 0xc92   : > { %3650 = vmatprep.subr.bf16.mxu0 %v4523_v23 }
 0xc93   : > { %v2192_v25 = vpop.f32.mrf.mxu0 }
 0xc94   : > { %v2193_v27 = vadd.f32 %v3362_v22, %v2192_v25  ;;  %2413 = vrot.lane.b32.xlu1 %v2196_v11, %s4526_s0  ;;  %2524 = vrot.lane.b32.xlu0 %v2197_v54, %s4527_s23 }
 0xc95   : > { %v3637_v28 = vpop.f32.mrf.mxu0 }
 0xc96   : > { %v5135_v29 = vpack.c.bf16 %v2193_v27, %v2190_v26 }
 0xc98   : > { %2522 = vrot.lane.b32.xlu1 %v2196_v11, %s4527_s23  ;;  %3641 = vmatmul.mubr.msk.bf16.vlgmr.msra.gmra.mxu0 %vm1228_vm2, %v2196_v11 }
 0xc99   : > { %3645 = vmatpush3.bf16.msra.mxu1 %v5135_v29  ;;  %3652 = vmatprep.mubr.msk.bf16.mxu0 %vm4524_vm1, %v4523_v23 }
 0xc9a   : > { %3656 = vmatprep.subr.bf16.mxu1 %v4523_v23 }
 0xcf6   : > { %v2303_v32 = vpop.permute.xlu1 %2302 }
 0xd02   : > { %v2306_v30 = vpop.permute.xlu0 %2305  ;;  %v2416_v33 = vpop.permute.xlu1 %2415 }
 0xd03   : > { %v2311_v31 = vsel %vm1228_vm2, %v2306_v30, 0  ;;  %v2421_v34 = vsel %vm1228_vm2, %v2416_v33, 0 }
 0xd04   : > { %3651 = vmatpush3.bf16.xpose.msra.mxu0 %v2311_v31 }
 0xd05   : > { %3662 = vmatprep.subr.bf16.mxu0 %v4523_v23 }
 0xd06   : > { %v2525_v35 = vpop.permute.xlu0 %2524  ;;  %v2414_v36 = vpop.permute.xlu1 %2413 }
 0xd07   : > { %v2530_v37 = vsel %vm1228_vm2, %v2525_v35, 0 }
 0xd0a   : > { %v2523_v38 = vpop.permute.xlu1 %2522 }
 0xd0b   : > { %3653 = vmatmul.mubr.msk.bf16.vlgmr.msra.gmra.mxu0 %vm1228_vm2, %v2303_v32 }
 0xd0c   : > { %3663 = vmatpush3.bf16.xpose.msra.mxu0 %v2421_v34  ;;  %3664 = vmatprep.mubr.msk.bf16.mxu0 %vm4524_vm1, %v4523_v23 }
 0xd0d   : > { %3674 = vmatprep.subr.bf16.mxu0 %v4523_v23 }
 0xd13   : > { %3665 = vmatmul.mubr.msk.bf16.vlgmr.msra.gmra.mxu0 %vm1228_vm2, %v2414_v36 }
 0xd14   : > { %3675 = vmatpush3.bf16.xpose.msra.mxu0 %v2530_v37  ;;  %3676 = vmatprep.mubr.msk.bf16.mxu0 %vm4524_vm1, %v4523_v23 }
 0xd15   : > { %3686 = vmatprep.subr.bf16.mxu0 %v4523_v23 }
 0xd1b   : > { %3677 = vmatmul.mubr.msk.bf16.vlgmr.msra.gmra.mxu0 %vm1228_vm2, %v2523_v38 }
 0xd1c   : > { %3690 = vmatprep.mubr.msk.bf16.mxu0 %vm4524_vm1, %v4523_v23 }
 0xd58   : > { %v2239_v39 = vpop.f32.mrf.mxu0 }
 0xd59   : > { %v2245_v40 = vmul.f32 0.35355338, %v2239_v39 }
 0xd5a   : > { %v3642_v41 = vpop.f32.mrf.mxu0 }
 0xd5b   : > { %v2246_v42 = vsel %vm1276_vm3, %v2245_v40, -inf }
 0xd5c   : > { %2247 = vmax.xlane.f32.xlu0 %v2246_v42  ;;  %v2242_v43 = vpop.f32.mrf.mxu0 }
 0xd5e   : > { %v3643_v45 = vpop.f32.mrf.mxu0 }
 0xd5f   : > { %v3956_v45 = vld [vmem:[%s5307_s12 + $0x18] sm:$0xff]  }
 0xd60   : > { %3687 = vmatpush3.bf16.msra.mxu0 %v3956_v45 }
 0xd61   : > { %3688 = vmatprep.subr.bf16.mxu0 %v4523_v23 }
 0xdcb   : > { %v2347_v46 = vpop.f32.mrf.mxu0 }
 0xdcc   : > { %v2353_v47 = vmul.f32 0.35355338, %v2347_v46 }
 0xdcd   : > { %v3654_v48 = vpop.f32.mrf.mxu0 }
 0xdce   : > { %v2354_v49 = vsel %vm1276_vm3, %v2353_v47, -inf }
 0xdcf   : > { %2355 = vmax.xlane.f32.xlu1 %v2354_v49  ;;  %v2350_v50 = vpop.f32.mrf.mxu0 }
 0xdd1   : > { %v3655_v51 = vpop.f32.mrf.mxu0 }
 0xdd3   : > { %v2457_v52 = vpop.f32.mrf.mxu0 }
 0xdd4   : > { %v2463_v53 = vmul.f32 0.35355338, %v2457_v52 }
 0xdd5   : > { %v3666_v55 = vpop.f32.mrf.mxu0 }
 0xdd6   : > { %v2464_v56 = vsel %vm1276_vm3, %v2463_v53, -inf  ;;  %v3957_v55 = vld [vmem:[%s5307_s12 + $0x10] sm:$0xff]  }
 0xdd7   : > { %2465 = vmax.xlane.f32.xlu0 %v2464_v56  ;;  %v2460_v57 = vpop.f32.mrf.mxu0  ;;  %3689 = vmatpush3.bf16.msra.mxu0 %v3957_v55 }
 0xdd8   : > { %3702 = vmatprep.subr.bf16.mxu0 %v4523_v23 }
 0xdd9   : > { %v3667_v58 = vpop.f32.mrf.mxu0 }
 0xddb   : > { %v2566_v59 = vpop.f32.mrf.mxu0 }
 0xddc   : > { %v2572_v60 = vmul.f32 0.35355338, %v2566_v59 }
 0xddd   : > { %v3678_v61 = vpop.f32.mrf.mxu0 }
 0xdde   : > { %v2573_v62 = vsel %vm1276_vm3, %v2572_v60, -inf }
 0xddf   : > { %2574 = vmax.xlane.f32.xlu0 %v2573_v62  ;;  %v2569_v63 = vpop.f32.mrf.mxu0 }
 0xde1   : > { %v3679_v1 = vpop.f32.mrf.mxu0 }
 0xde5   : > { %v2248_v2 = vpop.xlane.xlu0 %2247 }
 0xde6   : > { %v2249_v3 = vsub.f32 %v2245_v40, %v2248_v2 }
 0xde8   : > { %v2250_v4 = vmul.f32 1.442695, %v2249_v3 }
 0xdea   : > { %3998 = vpow2.f32 %v2250_v4  ;;  %v3378_v4 = vld [vmem:[#allocation16 + $0x1] ss:$0 sm:$0xff] }
 0xdf7   : > { %v3999_v5 = vpop.eup %3998 }
 0xdf8   : > { %v2252_v0 = vsel %vm1276_vm3, %v3999_v5, 0.0 }
 0xdf9   : > { %2253 = vadd.xlane.f32.xlu0 %v2252_v0 }
 0xe58   : > { %v2356_v6 = vpop.xlane.xlu1 %2355 }
 0xe59   : > { %v2357_v7 = vsub.f32 %v2353_v47, %v2356_v6 }
 0xe5b   : > { %v2358_v8 = vmul.f32 1.442695, %v2357_v7 }
 0xe5d   : > { %4000 = vpow2.f32 %v2358_v8 }
 0xe60   : > { %v2466_v10 = vpop.xlane.xlu0 %2465 }
 0xe61   : > { %v2467_v11 = vsub.f32 %v2463_v53, %v2466_v10 }
 0xe63   : > { %v2468_v12 = vmul.f32 1.442695, %v2467_v11 }
 0xe65   : > { %4002 = vpow2.f32 %v2468_v12 }
 0xe68   : > { %v2575_v17 = vpop.xlane.xlu0 %2574 }
 0xe69   : > { %v2576_v19 = vsub.f32 %v2572_v60, %v2575_v17  ;;  %v3958_v17 = vld [vmem:[#allocation20 + $0x18] sm:$0xff]  }
 0xe6a   : > { %v4001_v13 = vpop.eup %4000 }
 0xe6b   : > { %v2360_v14 = vsel %vm1276_vm3, %v4001_v13, 0.0  ;;  %v2577_v9 = vmul.f32 1.442695, %v2576_v19 }
 0xe6c   : > { %2361 = vadd.xlane.f32.xlu1 %v2360_v14 }
 0xe72   : > { %v4003_v15 = vpop.eup %4002 }
 0xe73   : > { %v2470_v16 = vsel %vm1276_vm3, %v4003_v15, 0.0 }
 0xe74   : > { %2471 = vadd.xlane.f32.xlu0 %v2470_v16 }
 0xe7d   : > { %2476 = vrot.lane.b32.xlu1 %v5135_v29, %s4526_s0  ;;  %s5390_s0 = sld [smem:[#allocation52_spill]] }
 0xe82   : > { %v2254_v18 = vpop.xlane.xlu0 %2253 }
 0xe83   : > { %4004 = vrcp.f32 %v2254_v18  ;;  %v3959_v18 = vld [vmem:[#allocation20 + $0x10] sm:$0xff]  }
 0xe84   : > { %4006 = vpow2.f32 %v2577_v9 }
 0xe8a   : > { %2367 = vrot.lane.b32.xlu0 %v5135_v29, %s4525_s24  ;;  %s4531_s24 = smov [#allocation26]  }
 0xe90   : > { %v4005_v54 = vpop.eup %4004 }
 0xe91   : > { %v2256_v20 = vmul.f32 %v4005_v54, %v3999_v5  ;;  %v4007_v22 = vpop.eup %4006 }
 0xe92   : > { %v2579_v24 = vsel %vm1276_vm3, %v4007_v22, 0.0 }
 0xe93   : > { %v2257_v21 = vpack.c.bf16 %v2256_v20, %v2256_v20  ;;  %v3382_v20 = vld [vmem:[#allocation17 + $0x1] ss:$0 sm:$0xff] }
 0xe95   : > { %3647 = vmatmul.mubr.msk.bf16.vlgmr.msra.gmra.mxu1 %vm1276_vm3, %v2257_v21 }
 0xe96   : > { %3658 = vmatprep.mubr.msk.bf16.mxu1 %vm4524_vm1, %v4523_v23 }
 0xea1   : > { %2580 = vadd.xlane.f32.xlu1 %v2579_v24 }
 0xeb2   : > { %2585 = vrot.lane.b32.xlu1 %v5135_v29, %s4527_s23  ;;  %s940_s23 = sand.u32 1, %s4494_s26  }
 0xeb3   : > { %s3049_s28 = scalar_lea.sflag [#allocation4], %s940_s23 }
 0xef5   : > { %v2362_v25 = vpop.xlane.xlu1 %2361 }
 0xef6   : > { %4008 = vrcp.f32 %v2362_v25 }
 0xef9   : > { %v2477_v32 = vpop.permute.xlu1 %2476 }
 0xefd   : > { %v2472_v26 = vpop.xlane.xlu0 %2471 }
 0xefe   : > { %4010 = vrcp.f32 %v2472_v26 }
 0xf01   : > { %v2368_v27 = vpop.permute.xlu0 %2367 }
 0xf02   : > { %3657 = vmatpush3.bf16.msra.mxu1 %v2368_v27  ;;  %v3960_v27 = vld [vmem:[%s5313_s18 + $0x78] sm:$0xff]  }
 0xf03   : > { %v4009_v28 = vpop.eup %4008  ;;  %3668 = vmatprep.subr.bf16.mxu1 %v4523_v23 }
 0xf04   : > { %v2364_v30 = vmul.f32 %v4009_v28, %v4001_v13  ;;  %v3961_v28 = vld [vmem:[%s5313_s18 + $0x70] sm:$0xff]  }
 0xf06   : > { %v2365_v31 = vpack.c.bf16 %v2364_v30, %v2364_v30  ;;  %v3962_v30 = vld [vmem:[%s5313_s18 + $0x68] sm:$0xff]  }
 0xf08   : > { %3659 = vmatmul.mubr.msk.bf16.vlgmr.msra.gmra.mxu1 %vm1276_vm3, %v2365_v31  ;;  %v3963_v31 = vld [vmem:[%s5313_s18 + $0x60] sm:$0xff]  }
 0xf09   : > { %3669 = vmatpush3.bf16.msra.mxu1 %v2477_v32  ;;  %3670 = vmatprep.mubr.msk.bf16.mxu1 %vm4524_vm1, %v4523_v23  ;;  %v3964_v32 = vld [vmem:[%s5313_s18 + $0x58] sm:$0xff]  }
 0xf0a   : > { %3680 = vmatprep.subr.bf16.mxu1 %v4523_v23 }
 0xf0b   : > { %v4011_v29 = vpop.eup %4010 }
 0xf0c   : > { %v2474_v33 = vmul.f32 %v4011_v29, %v4003_v15  ;;  %v3965_v29 = vld [vmem:[%s5313_s18 + $0x50] sm:$0xff]  }
 0xf0e   : > { %v2475_v34 = vpack.c.bf16 %v2474_v33, %v2474_v33  ;;  %v3966_v33 = vld [vmem:[%s5313_s18 + $0x48] sm:$0xff]  }
 0xf10   : > { %3671 = vmatmul.mubr.msk.bf16.vlgmr.msra.gmra.mxu1 %vm1276_vm3, %v2475_v34  ;;  %v3967_v34 = vld [vmem:[%s5313_s18 + $0x40] sm:$0xff]  }
 0xf11   : > { %3682 = vmatprep.mubr.msk.bf16.mxu1 %vm4524_vm1, %v4523_v23 }
 0xf2a   : > { %v2581_v35 = vpop.xlane.xlu1 %2580 }
 0xf2b   : > { %4012 = vrcp.f32 %v2581_v35  ;;  %v3384_v35 = vld [vmem:[#allocation22 + $0x1] ss:$0 sm:$0xff] }
 0xf2e   : > { %v2586_v36 = vpop.permute.xlu1 %2585 }
 0xf2f   : > { %3681 = vmatpush3.bf16.msra.mxu1 %v2586_v36 }
 0xf30   : > { %3694 = vmatprep.subr.bf16.mxu1 %v4523_v23 }
 0xf38   : > { %v4013_v37 = vpop.eup %4012 }
 0xf39   : > { %v2583_v38 = vmul.f32 %v4013_v37, %v4007_v22  ;;  %v3383_v22 = vld [vmem:[#allocation19 + $0x1] ss:$0 sm:$0xff] }
 0xf3b   : > { %v2584_v39 = vpack.c.bf16 %v2583_v38, %v2583_v38 }
 0xf3d   : > { %3683 = vmatmul.mubr.msk.bf16.vlgmr.msra.gmra.mxu1 %vm1276_vm3, %v2584_v39 }
 0xf3e   : > { %3698 = vmatprep.mubr.msk.bf16.mxu1 %vm4524_vm1, %v4523_v23  ;;  %3695 = vmatpush3.bf16.msra.mxu1 %v3958_v17 }
 0xf3f   : > { %3696 = vmatprep.subr.bf16.mxu1 %v4523_v23 }
 0xf42   : > { %3697 = vmatpush3.bf16.msra.mxu1 %v3959_v18 }
 0xf43   : > { %3722 = vmatprep.subr.bf16.mxu1 %v4523_v23 }
 0xf55   : > { %v2295_v40 = vpop.f32.mrf.mxu1 }
 0xf57   : > { %v3648_v41 = vpop.f32.mrf.mxu1 }
 0xf59   : > { %v2298_v42 = vpop.f32.mrf.mxu1 }
 0xf5b   : > { %v3649_v43 = vpop.f32.mrf.mxu1 }
 0xfc8   : > { %v2407_v46 = vpop.f32.mrf.mxu1 }
 0xfc9   : > { %2632 = vrot.lane.b32.xlu1 %v2407_v46, %s4528_s2  ;;  %s941_s2 = scalar_lea.vmem [#allocation26], %s940_s23 }
 0xfca   : > { %v3660_v47 = vpop.f32.mrf.mxu1 }
 0xfcc   : > { %v2410_v48 = vpop.f32.mrf.mxu1 }
 0xfce   : > { %v3661_v49 = vpop.f32.mrf.mxu1 }
 0xfd0   : > { %v2516_v50 = vpop.f32.mrf.mxu1 }
 0xfd1   : > { %2636 = vrot.lane.b32.xlu0 %v2516_v50, %s4529_s30  ;;  %s3061_s30 = sshll.u32 %s941_s2, 4  ;;  %s3062_s30 = int_to_ptr.vmem [resolvable:$true] %s3061_s30 }
 0xfd2   : > { %v3672_v51 = vpop.f32.mrf.mxu1  ;;  %s4410_s27 = scalar_lea.vmem %s3062_s30, 16 }
 0xfd3   : > { %p4411_p10 = scmp.ne.s32.totalorder %s3062_s30, %s4410_s27 }
 0xfd4   : > { %v2519_v52 = vpop.f32.mrf.mxu1 }
 0xfd5   : > { %v3404_v52 = vld [vmem:[#allocation23 + $0x1] ss:$0 sm:$0xff]  ;;  %p4412_p12 = pnand %p4411_p10, %p5393_p2 }
 0xfd6   : > { %v3673_v53 = vpop.f32.mrf.mxu1 }
 0xfd7   : > { %p4413_p4 = pneg %p4412_p12 }
 0xffd   : > { %v2625_v56 = vpop.f32.mrf.mxu1 }
 0xffe   : > { %2640 = vrot.lane.b32.xlu1 %v2625_v56, %s5389_s29  ;;  %s3419_s29 = sshll.u32 %s4678_s6, 4 }
 0xfff   : > { %v3684_v57 = vpop.f32.mrf.mxu1  ;;  %s3059_s25 = scalar_lea.hbm %s5392_s8, %s3419_s29 }
0x1001   : > { %v2628_v58 = vpop.f32.mrf.mxu1 }
0x1003   : > { %v3685_v59 = vpop.f32.mrf.mxu1 }
0x103b   : > { %v2633_v60 = vpop.permute.xlu1 %2632 }
0x103c   : > { %v2643_v62 = vsel %vm1228_vm2, %v2295_v40, %v2633_v60 }
0x1043   : > { %v2637_v61 = vpop.permute.xlu0 %2636 }
0x1044   : > { %v2644_v63 = vsel %vm1276_vm3, %v2643_v62, %v2637_v61 }
0x1070   : > { %v2641_v1 = vpop.permute.xlu1 %2640 }
0x1071   : > { %v2645_v2 = vsel %vm1676_vm4, %v2644_v63, %v2641_v1 }
0x1072   : > { %v2653_v3 = vpack.c.bf16 %v2645_v2, %v2645_v2 }
0x1074   : > { %3691 = vmatmul.mubr.msk.bf16.vlgmr.msra.gmra.mxu0 %vm953_vm0, %v2653_v3  ;;  %v3968_v3 = vld [vmem:[#allocation25 + $0x8] sm:$0xff]  }
0x1075   : > { %3718 = vmatprep.mubr.msk.bf16.mxu0 %vm4524_vm1, %v4523_v23  ;;  %3703 = vmatpush3.bf16.msra.mxu0 %v3960_v27 }
0x1076   : > { %3704 = vmatprep.subr.bf16.mxu0 %v4523_v23 }
0x1079   : > { %3705 = vmatpush3.bf16.msra.mxu0 %v3961_v28 }
0x107a   : > { %3706 = vmatprep.subr.bf16.mxu0 %v4523_v23 }
0x107d   : > { %3707 = vmatpush3.bf16.msra.mxu0 %v3962_v30 }
0x107e   : > { %3708 = vmatprep.subr.bf16.mxu0 %v4523_v23 }
0x1081   : > { %3709 = vmatpush3.bf16.msra.mxu0 %v3963_v31 }
0x1082   : > { %3710 = vmatprep.subr.bf16.mxu0 %v4523_v23 }
0x1085   : > { %3711 = vmatpush3.bf16.msra.mxu0 %v3964_v32 }
0x1086   : > { %3712 = vmatprep.subr.bf16.mxu0 %v4523_v23 }
0x1089   : > { %3713 = vmatpush3.bf16.msra.mxu0 %v3965_v29 }
0x108a   : > { %3714 = vmatprep.subr.bf16.mxu0 %v4523_v23 }
0x108d   : > { %3715 = vmatpush3.bf16.msra.mxu0 %v3966_v33 }
0x108e   : > { %3716 = vmatprep.subr.bf16.mxu0 %v4523_v23 }
0x1091   : > { %3717 = vmatpush3.bf16.msra.mxu0 %v3967_v34 }
0x1134   : > { %v2709_v5 = vpop.f32.mrf.mxu0 }
0x1135   : > { %v2710_v0 = vadd.f32 %v3378_v4, %v2709_v5  ;;  %v3969_v4 = vld [vmem:[#allocation25] sm:$0xff]  }
0x1136   : > { %v3692_v6 = vpop.f32.mrf.mxu0 }
0x1137   : > { %v5205_v7 = vadd.f32 %v2710_v0, %v5087_v44 }
0x1138   : > { %v2712_v8 = vpop.f32.mrf.mxu0 }
0x1139   : > { %v2720_v10 = vsel %vm953_vm0, %v5205_v7, 0.0  ;;  %v3413_v8 = vld [vmem:[%s5315_s20] ss:$0 sm:$0xff] }
0x113a   : > { %2721 = vadd.xlane.f32.xlu0 %v2720_v10  ;;  %v3693_v11 = vpop.f32.mrf.mxu0 }
0x113b   : > { %v3414_v11 = vld [vmem:[%s5316_s21] ss:$0 sm:$0xff] }
0x11c3   : > { %v2722_v12 = vpop.xlane.xlu0 %2721 }
0x11c4   : > { %v2723_v13 = vmul.f32 0.03125, %v2722_v12 }
0x11c6   : > { %v2724_v14 = vsub.f32 %v5205_v7, %v2723_v13 }
0x11c8   : > { %v2725_v15 = vmul.f32 %v2724_v14, %v2724_v14 }
0x11ca   : > { %v2726_v16 = vsel %vm953_vm0, %v2725_v15, 0.0 }
0x11cb   : > { %2727 = vadd.xlane.f32.xlu1 %v2726_v16 }
0x1254   : > { %v2728_v44 = vpop.xlane.xlu1 %2727 }
0x1255   : > { %v2729_v19 = vmul.f32 0.03125, %v2728_v44 }
0x1257   : > { %v2730_v9 = vadd.f32 1e-05, %v2729_v19 }
0x1259   : > { %4014 = vrsqrt.f32 %v2730_v9 }
0x1266   : > { %v4015_v54 = vpop.eup %4014 }
0x1267   : > { %v2732_v21 = vmul.f32 %v4015_v54, %v2724_v14 }
0x1269   : > { %v2739_v24 = vmul.f32 %v3382_v20, %v2732_v21 }
0x126b   : > { %v2746_v25 = vadd.f32 %v3383_v22, %v2739_v24 }
0x126d   : > { %v2754_v26 = vpack.c.bf16 %v2746_v25, %v2746_v25 }
0x126f   : > { %3699 = vmatmul.mubr.msk.bf16.vlgmr.msra.gmra.mxu1 %vm953_vm0, %v2754_v26 }
0x1270   : > { %3726 = vmatprep.mubr.msk.bf16.mxu1 %vm4524_vm1, %v4523_v23  ;;  %3723 = vmatpush3.bf16.msra.mxu1 %v3968_v3 }
0x1271   : > { %3724 = vmatprep.subr.bf16.mxu1 %v4523_v23  ;;  %v3415_v23 = vld [vmem:[%s5390_s0] ss:$0 sm:$0xff]  ;;  %s4414_s0 = sshll.u32 %s4531_s24, 4  ;;  %s4415_s0 = int_to_ptr.vmem [resolvable:$false] %s4414_s0 }
0x1272   : > { %s4416_s6 = scalar_lea.vmem %s4415_s0, 32  ;;  %p4417_p9 = scmp.lt.s32.totalorder %s3062_s30, %s4415_s0 }
0x1273   : > { %p4418_p7 = scmp.lt.s32.totalorder %s4416_s6, %s4410_s27 }
0x1274   : > { %3725 = vmatpush3.bf16.msra.mxu1 %v3969_v4 }
0x1275   : > { %p4419_p8 = por %p4418_p7, %p4417_p9 }
0x1277   : > { %p4420_p0 = pnand %p4419_p8, %p4413_p4 }
0x132f   : > { %v2810_v36 = vpop.f32.mrf.mxu1 }
0x1330   : > { %v2811_v37 = vadd.f32 %v3384_v35, %v2810_v36 }
0x1331   : > { %v3700_v38 = vpop.f32.mrf.mxu1 }
0x1332   : > { %v2816_v39 = vmul.f32 %v2811_v37, %v2811_v37 }
0x1333   : > { %v2813_v40 = vpop.f32.mrf.mxu1 }
0x1334   : > { %v2817_v41 = vmul.f32 %v2816_v39, %v2811_v37 }
0x1335   : > { %v3701_v42 = vpop.f32.mrf.mxu1 }
0x1336   : > { %v2818_v43 = vmul.f32 0.044715, %v2817_v41 }
0x1338   : > { %v2819_v45 = vadd.f32 %v2818_v43, %v2811_v37 }
0x133a   : > { %v2820_v46 = vmul.f32 0.7978846, %v2819_v45 }
0x133c   : > { %4016 = vtanh.f32 %v2820_v46 }
0x1349   : > { %v4017_v47 = vpop.eup %4016 }
0x134a   : > { %v2822_v48 = vadd.f32 1.0, %v4017_v47 }
0x134c   : > { %v2823_v49 = vmul.f32 0.5, %v2822_v48 }
0x134e   : > { %v2824_v50 = vmul.f32 %v2823_v49, %v2811_v37 }
0x1350   : > { %v2844_v51 = vpack.c.bf16 %v2824_v50, %v2824_v50 }
0x1352   : > { %3719 = vmatmul.mubr.bf16.vlgmr.msra.gmra.mxu0 %v2844_v51 }
0x1412   : > { %v2933_v53 = vpop.f32.mrf.mxu0 }
0x1413   : > { %v2934_v55 = vadd.f32 %v3404_v52, %v2933_v53 }
0x1414   : > { %v3720_v56 = vpop.f32.mrf.mxu0 }
0x1415   : > { %v2939_v57 = vadd.f32 %v2934_v55, %v5205_v7 }
0x1416   : > { %v2936_v58 = vpop.f32.mrf.mxu0 }
0x1417   : > { %v2942_v59 = vsel %vm953_vm0, %v2939_v57, 0.0 }
0x1418   : > { %2943 = vadd.xlane.f32.xlu0 %v2942_v59  ;;  %v3721_v60 = vpop.f32.mrf.mxu0 }
0x14a1   : > { %v2944_v61 = vpop.xlane.xlu0 %2943 }
0x14a2   : > { %v2945_v62 = vmul.f32 0.03125, %v2944_v61 }
0x14a4   : > { %v2946_v63 = vsub.f32 %v2939_v57, %v2945_v62 }
0x14a6   : > { %v2947_v1 = vmul.f32 %v2946_v63, %v2946_v63 }
0x14a8   : > { %v2948_v2 = vsel %vm953_vm0, %v2947_v1, 0.0 }
0x14a9   : > { %2949 = vadd.xlane.f32.xlu0 %v2948_v2 }
0x1532   : > { %v2950_v5 = vpop.xlane.xlu0 %2949 }
0x1533   : > { %v2951_v0 = vmul.f32 0.03125, %v2950_v5 }
0x1535   : > { %v2952_v6 = vadd.f32 1e-05, %v2951_v0 }
0x1537   : > { %4018 = vrsqrt.f32 %v2952_v6 }
0x1544   : > { %v4019_v7 = vpop.eup %4018 }
0x1545   : > { %v2954_v10 = vmul.f32 %v4019_v7, %v2946_v63 }
0x1547   : > { %v2961_v12 = vmul.f32 %v3413_v8, %v2954_v10 }
0x1549   : > { %v2968_v13 = vadd.f32 %v3414_v11, %v2961_v12 }
0x154b   : > { %v2974_v14 = vpack.c.bf16 %v2968_v13, %v2968_v13 }
0x154d   : > { %3727 = vmatmul.mubr.msk.bf16.vlgmr.msra.gmra.mxu1 %vm953_vm0, %v2974_v14 }
0x160d   : > { %v3030_v15 = vpop.f32.mrf.mxu1 }
0x160e   : > { %v3031_v16 = vadd.f32 %v3415_v23, %v3030_v15 }
0x160f   : > { %v3728_v17 = vpop.f32.mrf.mxu1 }
0x1610   : > { %v3037_v18 = vsel %vm3036_vm5, %v3031_v16, 0.0 }
0x1611   : > { %v3038_v44 = vrot.slane %v3037_v18, 4  ;;  %v3033_v19 = vpop.f32.mrf.mxu1 }
0x1613   : > { %v3039_v9 = vadd.f32 %v3038_v44, %v3037_v18  ;;  %v3729_v54 = vpop.f32.mrf.mxu1 }
0x1615   : > { %v3040_v20 = vrot.slane %v3039_v9, 2 }
0x1617   : > { %v3041_v21 = vadd.f32 %v3040_v20, %v3039_v9 }
0x1619   : > { %v3042_v22 = vrot.slane %v3041_v21, 1 }
0x161b   : > { %v3043_v24 = vadd.f32 %v3042_v22, %v3041_v21 }
0x161d   : > { %v3045_v25 = vmul.f32 0.125, %v3043_v24 }
0x161f   : > { %3047 = vst.msk [vmem:[%s941_s2] sm:$0x1] %vm3046_vm6, %v3045_v25 }
0x1620   : > { %4423 = shalt.err (!%p4420_p0)
}
0x1621   : > { %s4424_s3 = scalar_lea.hbm %s3059_s25, 16  ;;  %s4428_s2 = scalar_lea.hbm %s5392_s8, 32 }
0x1622   : > { %p4425_p11 = scmp.ne.s32.totalorder %s3059_s25, %s4424_s3  ;;  %p4429_p13 = scmp.lt.s32.totalorder %s3059_s25, %s5392_s8 }
0x1623   : > { %p4430_p6 = scmp.lt.s32.totalorder %s4428_s2, %s4424_s3 }
0x1624   : > { %p4426_p1 = pnand %p4425_p11, %p5393_p2 }
0x1625   : > { %p4431_p5 = por %p4430_p6, %p4429_p13 }
0x1626   : > { %p4427_p3 = pneg %p4426_p1 }
0x1628   : > { %p4432_p10 = pnand %p4431_p5, %p4427_p3 }
0x162a   : > { %4435 = shalt.err (!%p4432_p10)
}
0x162b   : > { %3790 = dma.vmem_to_hbm [thread:$0]  (%p5393_p2), %s3062_s30, 16, %s3059_s25, %s3049_s28  }
0x162c PF: > { %s5394_s27 = sld [smem:[#allocation38_spill]] }
0x162d   : > { %s5395_s24 = sld [smem:[#allocation36_spill]] }
0x162e   : > { %s5396_s0 = sld [smem:[#allocation42_spill]] }
0x1632   : > { %p3872_p12 = scmp.ge.s32.totalorder %s5394_s27, 2 }
0x1633   : > { %s3073_s6 = sand.u32 1, %s5395_s24  }
0x1634   : > { %p5397_p4 = scmp.ne.s32.totalorder %s5396_s0, 0  ;;  %s3074_s23 = scalar_lea.sflag [#allocation4], %s3073_s6 }
0x1636   : > { %p3839_p9 = pnand %p3872_p12, %p5397_p4 }
0x1638   : > { %p3840_p7 = pneg %p3839_p9 }
0x163a   : > { %4485 = dma.done.wait (%p3840_p7), %s3074_s23, 16  }
0x163b   : > { %4487 = vsyncadd (%p3840_p7), %s3074_s23, 4294967280  ;;  %s5398_s28 = sld [smem:[#allocation39_spill]]  ;;  %s5401_s5 = smov %s4494_s26 }
0x163c   : > { %s5399_s3 = sld [smem:[#allocation37_spill]] }
0x163d   : > { %s5400_s27 = sld [smem:[#allocation40_spill]] }
0x1641   : > { %p42_p8 = scmp.ge.s32.totalorder %s5398_s28, 4  }
0x1642   : > { %s5402_s26 = smov %s5399_s3 }
0x1643   :  { %44 = sbr.rel (!%p42_p8) target bundleno = 23 (0x17), region = 228 }
0x1648   :  { %3078 = vsyncpa [#allocation3], 1 }
0x1649   :  { %3080 = vsyncpa [#allocation3 + $0x1], 1 }
0x164a   :  { %3081 = vsyncpa [#allocation6], 1 }
0x164b   :  { %3082 = vsyncpa [#allocation9], 1 }
0x164c   :  { %3083 = vsyncpa [#allocation12], 1 }
0x164d   :  { %3084 = vsyncpa [#allocation15], 1 }
0x164e   :  { %3085 = vsyncpa [#allocation18], 1 }
0x164f   :  { %3086 = vsyncpa [#allocation21], 1 }
0x1650   :  { %3087 = vsyncpa [#allocation24], 1 }
0x1651   :  { %3088 = vsyncpa [#allocation4], 1 }
0x1652   :  { %3090 = vsyncpa [#allocation4 + $0x1], 1 }

</bundles_post_ra>
